<compile_context>
chip_gen: v6e
topology: v6e:2x2x1
jax: 0.10.0
libtpu: 0.0.40
codegen_flags: <defaults>
</compile_context>

<pallas_src>
import functools

import jax
import jax.numpy as jnp
from jax import lax
from jax.experimental import pallas as pl
from jax.experimental.pallas import tpu as pltpu


def custom_loss_kernel(logits_ref, onehot_i_ref, wp_rows_ref,
                       df_i_ref, df_j_ref, onehot_j_ref,
                       partial_ref, dfn_i_ref, *, lamda, eps):
    """One (i, j) tile of the B x B similarity term (+ CE once per row block)."""
    j = pl.program_id(1)
    tb = df_i_ref.shape[0]

    @pl.when(j == 0)
    def _init_row_block():
        # cross_entropy(reduction='sum') over this row block:
        #   sum_a ( logsumexp(logits_a) - logits_a[target_a] )
        logits = logits_ref[...]                                       # (tb, C)
        onehot_i = onehot_i_ref[...]                                   # (tb, C)
        m = jnp.max(logits, axis=-1, keepdims=True)
        lse = m + jnp.log(jnp.sum(jnp.exp(logits - m), axis=-1, keepdims=True))
        picked = jnp.sum(onehot_i * logits, axis=-1, keepdims=True)
        ce_rows = lse - picked                                         # (tb, 1)
        ce_part = jnp.reshape(ce_rows, (tb // 8, 8, 1)).sum(axis=0)    # (8, 1)

        # Initialize the lane-dense partial slab with CE folded into lane 0.
        lane = lax.broadcasted_iota(jnp.int32, (8, tb), 1)
        partial_ref[...] = jnp.where(lane == 0, ce_part, 0.0)

        # Hoisted row-block invariant: normalized features, cached for all j.
        df_i = df_i_ref[...]
        norm_i = jnp.sqrt(jnp.sum(df_i * df_i, axis=-1, keepdims=True))
        dfn_i_ref[...] = df_i / (norm_i + eps)

    # Column-block normalized features (O(tb*D) per tile, negligible vs tb^2*D).
    df_j = df_j_ref[...]
    norm_j = jnp.sqrt(jnp.sum(df_j * df_j, axis=-1, keepdims=True))
    dfn_j = df_j / (norm_j + eps)

    # cos_Sim tile: (tb, tb), contract the feature dim on the MXU.
    cos_tile = lax.dot_general(dfn_i_ref[...], dfn_j,
                               (((1,), (1,)), ((), ())),
                               preferred_element_type=jnp.float32)

    # wp_Sim tile: wp_rows[a, :] = wp_matrix[target_a, :] was pre-gathered in XLA;
    # the column gather is a small one-hot matmul over the class dim.
    wp_tile = lax.dot_general(wp_rows_ref[...], onehot_j_ref[...],
                              (((1,), (1,)), ((), ())),
                              preferred_element_type=jnp.float32)

    diff = wp_tile - cos_tile
    wp3 = wp_tile * wp_tile * wp_tile            # explicit cube, no pow
    terms = wp3 * (diff * diff)                  # (tb, tb)

    # Reduce sublane groups -> (8, tb) and accumulate into the row-resident
    # output block with full-vreg adds.
    partial_ref[...] += lamda * jnp.reshape(terms, (tb // 8, 8, tb)).sum(axis=0)


def custom_loss(output, df, target, wp_matrix, lamda=1.0, eps=1e-9, tile=128):
    """output (B, C) f32, df (B, D) f32, target (B,) int, wp_matrix (C, C) f32."""
    output = output.astype(jnp.float32)
    df = df.astype(jnp.float32)
    wp_matrix = wp_matrix.astype(jnp.float32)
    target = target.astype(jnp.int32)

    B, C = output.shape
    D = df.shape[1]

    # Batch tiling: 128 works on all of v5e/v6e/v7x (256 also good on v6e/v7x).
    if B % tile == 0:
        tb = tile
    elif B % 8 == 0:
        tb = B              # small-B fallback: single block per grid axis
    else:
        # TODO(synk): pad + mask ragged batch sizes instead of rejecting them.
        raise ValueError("batch size must be a multiple of 8")
    nblk = B // tb

    # Targets never enter VMEM: true O(B*C) gather of wp rows, and a dense
    # one-hot computed once (used for CE 'picked' and the column gather).
    onehot = jax.nn.one_hot(target, C, dtype=jnp.float32)          # (B, C)
    wp_rows = jnp.take(wp_matrix, target, axis=0)                  # (B, C)

    kernel = functools.partial(custom_loss_kernel, lamda=float(lamda), eps=float(eps))

    partials = pl.pallas_call(
        kernel,
        out_shape=jax.ShapeDtypeStruct((nblk * 8, tb), jnp.float32),
        grid=(nblk, nblk),
        in_specs=[
            pl.BlockSpec((tb, C), lambda i, j: (i, 0)),   # logits, row block
            pl.BlockSpec((tb, C), lambda i, j: (i, 0)),   # one-hot, row block
            pl.BlockSpec((tb, C), lambda i, j: (i, 0)),   # wp rows (pre-gathered), row block
            pl.BlockSpec((tb, D), lambda i, j: (i, 0)),   # df, row block
            pl.BlockSpec((tb, D), lambda i, j: (j, 0)),   # df, column block
            pl.BlockSpec((tb, C), lambda i, j: (j, 0)),   # one-hot, column block
        ],
        out_specs=pl.BlockSpec((8, tb), lambda i, j: (i, 0)),
        scratch_shapes=[pltpu.VMEM((tb, D), jnp.float32)],
        compiler_params=pltpu.CompilerParams(
            # row blocks shard across TensorCores (v7x); j accumulates in-place.
            dimension_semantics=("parallel", "arbitrary"),
            vmem_limit_bytes=32 * 1024 * 1024,
        ),
    )(output, onehot, wp_rows, df, df, onehot)

    # Final reduction of the lane-dense per-row-block partial slabs.
    return jnp.sum(partials)


def custom_loss_ref(output, df, target, wp_matrix, lamda=1.0, eps=1e-9):
    """Pure-JAX reference mirroring the PyTorch forward."""
    logp = jax.nn.log_softmax(output, axis=-1)
    ce = -jnp.sum(jnp.take_along_axis(logp, target[:, None], axis=-1))
    norm = jnp.linalg.norm(df, axis=1, keepdims=True)
    df_n = df / (norm + eps)
    cos_sim = df_n @ df_n.T
    wp_sim = wp_matrix[target[:, None], target[None, :]]
    sim_sum = jnp.sum((wp_sim ** 3) * (wp_sim - cos_sim) ** 2)
    return ce + lamda * sim_sum


if __name__ == "__main__":
    B, C, D = 256, 10, 128   # batch (2x2 grid of 128-tiles), num classes, feature dim

    key = jax.random.PRNGKey(0)
    k1, k2, k3, k4 = jax.random.split(key, 4)

    output = jax.random.normal(k1, (B, C), dtype=jnp.float32)
    df = jax.random.normal(k2, (B, D), dtype=jnp.float32)
    target = jax.random.randint(k3, (B,), 0, C, dtype=jnp.int32)

    # Synthetic global wp_matrix: symmetric, values in [0, 1], ones on diagonal.
    wp_raw = jax.random.uniform(k4, (C, C), dtype=jnp.float32)
    wp_matrix = 0.5 * (wp_raw + wp_raw.T)
    wp_matrix = wp_matrix.at[jnp.arange(C), jnp.arange(C)].set(1.0)

    loss = custom_loss(output, df, target, wp_matrix, lamda=1.0, eps=1e-9)
    loss = jax.block_until_ready(loss)

    ref = custom_loss_ref(output, df, target, wp_matrix, lamda=1.0, eps=1e-9)
    assert jnp.allclose(loss, ref, rtol=5e-4, atol=1e-2), (loss, ref)

    print("KERNEL_OK")
</pallas_src>

<mosaic_0001>
module attributes {stable_mosaic.version = 11 : i64} {
  func.func @custom_loss_kernel(%arg0: i32, %arg1: i32, %arg2: memref<128x10xf32, #tpu.memory_space<vmem>>, %arg3: memref<128x10xf32, #tpu.memory_space<vmem>>, %arg4: memref<128x10xf32, #tpu.memory_space<vmem>>, %arg5: memref<128x128xf32, #tpu.memory_space<vmem>>, %arg6: memref<128x128xf32, #tpu.memory_space<vmem>>, %arg7: memref<128x10xf32, #tpu.memory_space<vmem>>, %arg8: memref<8x128xf32, #tpu.memory_space<vmem>>, %arg9: memref<128x128xf32, #tpu.memory_space<vmem>>) attributes {dimension_semantics = [#tpu.dimension_semantics<parallel>, #tpu.dimension_semantics<arbitrary>], iteration_bounds = array<i64: 2, 2>, scalar_prefetch = 0 : i64, scratch_operands = 1 : i64, tpu.core_type = #tpu.core_type<tc>, window_params = [{transform_indices = @transform_0, window_bounds = array<i64: 128, 10>}, {transform_indices = @transform_1, window_bounds = array<i64: 128, 10>}, {transform_indices = @transform_2, window_bounds = array<i64: 128, 10>}, {transform_indices = @transform_3, window_bounds = array<i64: 128, 128>}, {transform_indices = @transform_4, window_bounds = array<i64: 128, 128>}, {transform_indices = @transform_5, window_bounds = array<i64: 128, 10>}, {transform_indices = @transform_6, window_bounds = array<i64: 8, 128>}]} {
    %c0_i32 = arith.constant 0 : i32
    %0 = arith.cmpi eq, %arg1, %c0_i32 : i32
    %1 = arith.extui %0 : i1 to i32
    %c0_i32_0 = arith.constant 0 : i32
    %2 = arith.cmpi ne, %1, %c0_i32_0 : i32
    scf.if %2 {
      %c0_17 = arith.constant 0 : index
      %c0_18 = arith.constant 0 : index
      %29 = vector.load %arg2[%c0_17, %c0_18] : memref<128x10xf32, #tpu.memory_space<vmem>>, vector<128x10xf32>
      %c0_19 = arith.constant 0 : index
      %c0_20 = arith.constant 0 : index
      %30 = vector.load %arg3[%c0_19, %c0_20] : memref<128x10xf32, #tpu.memory_space<vmem>>, vector<128x10xf32>
      %cst_21 = arith.constant dense<0xFF800000> : vector<128xf32>
      %31 = vector.multi_reduction <maximumf>, %29, %cst_21 [1] : vector<128x10xf32> to vector<128xf32>
      %32 = vector.shape_cast %31 : vector<128xf32> to vector<128x1xf32>
      %33 = vector.broadcast %32 : vector<128x1xf32> to vector<128x10xf32>
      %34 = arith.subf %29, %33 : vector<128x10xf32>
      %35 = math.exp %34 : vector<128x10xf32>
      %cst_22 = arith.constant dense<0.000000e+00> : vector<128xf32>
      %36 = vector.multi_reduction <add>, %35, %cst_22 [1] : vector<128x10xf32> to vector<128xf32>
      %37 = vector.shape_cast %36 : vector<128xf32> to vector<128x1xf32>
      %38 = math.log %37 : vector<128x1xf32>
      %39 = arith.addf %32, %38 : vector<128x1xf32>
      %40 = arith.mulf %30, %29 : vector<128x10xf32>
      %cst_23 = arith.constant dense<0.000000e+00> : vector<128xf32>
      %41 = vector.multi_reduction <add>, %40, %cst_23 [1] : vector<128x10xf32> to vector<128xf32>
      %42 = vector.shape_cast %41 : vector<128xf32> to vector<128x1xf32>
      %43 = arith.subf %39, %42 : vector<128x1xf32>
      %44 = vector.shape_cast %43 : vector<128x1xf32> to vector<16x8x1xf32>
      %cst_24 = arith.constant dense<0.000000e+00> : vector<8x1xf32>
      %45 = vector.multi_reduction <add>, %44, %cst_24 [0] : vector<16x8x1xf32> to vector<8x1xf32>
      %46 = tpu.iota {dimensions = array<i32: 1>} : vector<8x128xi32>
      %c0_i32_25 = arith.constant 0 : i32
      %47 = vector.broadcast %c0_i32_25 : i32 to vector<8x128xi32>
      %48 = arith.cmpi eq, %46, %47 : vector<8x128xi32>
      %cst_26 = arith.constant 0.000000e+00 : f32
      %49 = vector.shape_cast %45 : vector<8x1xf32> to vector<8x1xf32>
      %50 = vector.broadcast %49 : vector<8x1xf32> to vector<8x128xf32>
      %51 = vector.broadcast %cst_26 : f32 to vector<8x128xf32>
      %52 = arith.select %48, %50, %51 : vector<8x128xi1>, vector<8x128xf32>
      %c0_27 = arith.constant 0 : index
      %c0_28 = arith.constant 0 : index
      %53 = vector.load %arg8[%c0_27, %c0_28] : memref<8x128xf32, #tpu.memory_space<vmem>>, vector<8x128xf32>
      tpu.vector_store %arg8[%c0_27, %c0_28], %52 {strides = array<i32>} : memref<8x128xf32, #tpu.memory_space<vmem>>, vector<8x128xf32>,
      %c0_29 = arith.constant 0 : index
      %c0_30 = arith.constant 0 : index
      %54 = vector.load %arg5[%c0_29, %c0_30] : memref<128x128xf32, #tpu.memory_space<vmem>>, vector<128x128xf32>
      %55 = arith.mulf %54, %54 : vector<128x128xf32>
      %cst_31 = arith.constant dense<0.000000e+00> : vector<128xf32>
      %56 = vector.multi_reduction <add>, %55, %cst_31 [1] : vector<128x128xf32> to vector<128xf32>
      %57 = vector.shape_cast %56 : vector<128xf32> to vector<128x1xf32>
      %58 = math.sqrt %57 : vector<128x1xf32>
      %cst_32 = arith.constant 9.99999971E-10 : f32
      %59 = vector.broadcast %cst_32 : f32 to vector<128x1xf32>
      %60 = arith.addf %58, %59 : vector<128x1xf32>
      %61 = vector.broadcast %60 : vector<128x1xf32> to vector<128x128xf32>
      %62 = arith.divf %54, %61 : vector<128x128xf32>
      %c0_33 = arith.constant 0 : index
      %c0_34 = arith.constant 0 : index
      %63 = vector.load %arg9[%c0_33, %c0_34] : memref<128x128xf32, #tpu.memory_space<vmem>>, vector<128x128xf32>
      tpu.vector_store %arg9[%c0_33, %c0_34], %62 {strides = array<i32>} : memref<128x128xf32, #tpu.memory_space<vmem>>, vector<128x128xf32>,
    } else {
    }
    %c0 = arith.constant 0 : index
    %c0_1 = arith.constant 0 : index
    %3 = vector.load %arg6[%c0, %c0_1] : memref<128x128xf32, #tpu.memory_space<vmem>>, vector<128x128xf32>
    %4 = arith.mulf %3, %3 : vector<128x128xf32>
    %cst = arith.constant dense<0.000000e+00> : vector<128xf32>
    %5 = vector.multi_reduction <add>, %4, %cst [1] : vector<128x128xf32> to vector<128xf32>
    %6 = vector.shape_cast %5 : vector<128xf32> to vector<128x1xf32>
    %7 = math.sqrt %6 : vector<128x1xf32>
    %cst_2 = arith.constant 9.99999971E-10 : f32
    %8 = vector.broadcast %cst_2 : f32 to vector<128x1xf32>
    %9 = arith.addf %7, %8 : vector<128x1xf32>
    %10 = vector.broadcast %9 : vector<128x1xf32> to vector<128x128xf32>
    %11 = arith.divf %3, %10 : vector<128x128xf32>
    %c0_3 = arith.constant 0 : index
    %c0_4 = arith.constant 0 : index
    %12 = vector.load %arg9[%c0_3, %c0_4] : memref<128x128xf32, #tpu.memory_space<vmem>>, vector<128x128xf32>
    %cst_5 = arith.constant dense<0.000000e+00> : vector<128x128xf32>
    %13 = tpu.matmul %12, %11, %cst_5 {dimension_numbers = #tpu.dot_dimension_numbers<[1], [1], [0], [0], [0, 0, 1, 0], [], []>} : vector<128x128xf32>, vector<128x128xf32>, vector<128x128xf32> -> vector<128x128xf32>
    %c0_6 = arith.constant 0 : index
    %c0_7 = arith.constant 0 : index
    %14 = vector.load %arg4[%c0_6, %c0_7] : memref<128x10xf32, #tpu.memory_space<vmem>>, vector<128x10xf32>
    %c0_8 = arith.constant 0 : index
    %c0_9 = arith.constant 0 : index
    %15 = vector.load %arg7[%c0_8, %c0_9] : memref<128x10xf32, #tpu.memory_space<vmem>>, vector<128x10xf32>
    %cst_10 = arith.constant dense<0.000000e+00> : vector<128x128xf32>
    %16 = tpu.matmul %14, %15, %cst_10 {dimension_numbers = #tpu.dot_dimension_numbers<[1], [1], [0], [0], [0, 0, 1, 0], [], []>} : vector<128x10xf32>, vector<128x10xf32>, vector<128x128xf32> -> vector<128x128xf32>
    %17 = arith.subf %16, %13 : vector<128x128xf32>
    %18 = arith.mulf %16, %16 : vector<128x128xf32>
    %19 = arith.mulf %18, %16 : vector<128x128xf32>
    %20 = arith.mulf %17, %17 : vector<128x128xf32>
    %21 = arith.mulf %19, %20 : vector<128x128xf32>
    %c0_11 = arith.constant 0 : index
    %c0_12 = arith.constant 0 : index
    %22 = vector.load %arg8[%c0_11, %c0_12] : memref<8x128xf32, #tpu.memory_space<vmem>>, vector<8x128xf32>
    %23 = vector.shape_cast %21 : vector<128x128xf32> to vector<16x8x128xf32>
    %cst_13 = arith.constant dense<0.000000e+00> : vector<8x128xf32>
    %24 = vector.multi_reduction <add>, %23, %cst_13 [0] : vector<16x8x128xf32> to vector<8x128xf32>
    %cst_14 = arith.constant 1.000000e+00 : f32
    %25 = vector.broadcast %cst_14 : f32 to vector<8x128xf32>
    %26 = arith.mulf %25, %24 : vector<8x128xf32>
    %27 = arith.addf %22, %26 : vector<8x128xf32>
    %c0_15 = arith.constant 0 : index
    %c0_16 = arith.constant 0 : index
    %28 = vector.load %arg8[%c0_15, %c0_16] : memref<8x128xf32, #tpu.memory_space<vmem>>, vector<8x128xf32>
    tpu.vector_store %arg8[%c0_15, %c0_16], %27 {strides = array<i32>} : memref<8x128xf32, #tpu.memory_space<vmem>>, vector<8x128xf32>,
    return
  }
  func.func @transform_0(%arg0: i32, %arg1: i32) -> (i32, i32) {
    %c0_i32 = arith.constant 0 : i32
    %c0_i32_0 = arith.constant 0 : i32
    return %arg0, %c0_i32 : i32, i32
  }
  func.func @transform_1(%arg0: i32, %arg1: i32) -> (i32, i32) {
    %c0_i32 = arith.constant 0 : i32
    %c0_i32_0 = arith.constant 0 : i32
    return %arg0, %c0_i32 : i32, i32
  }
  func.func @transform_2(%arg0: i32, %arg1: i32) -> (i32, i32) {
    %c0_i32 = arith.constant 0 : i32
    %c0_i32_0 = arith.constant 0 : i32
    return %arg0, %c0_i32 : i32, i32
  }
  func.func @transform_3(%arg0: i32, %arg1: i32) -> (i32, i32) {
    %c0_i32 = arith.constant 0 : i32
    %c0_i32_0 = arith.constant 0 : i32
    return %arg0, %c0_i32 : i32, i32
  }
  func.func @transform_4(%arg0: i32, %arg1: i32) -> (i32, i32) {
    %c0_i32 = arith.constant 0 : i32
    %c0_i32_0 = arith.constant 0 : i32
    return %arg1, %c0_i32 : i32, i32
  }
  func.func @transform_5(%arg0: i32, %arg1: i32) -> (i32, i32) {
    %c0_i32 = arith.constant 0 : i32
    %c0_i32_0 = arith.constant 0 : i32
    return %arg1, %c0_i32 : i32, i32
  }
  func.func @transform_6(%arg0: i32, %arg1: i32) -> (i32, i32) {
    %c0_i32 = arith.constant 0 : i32
    %c0_i32_0 = arith.constant 0 : i32
    return %arg0, %c0_i32 : i32, i32
  }
}

</mosaic_0001>

<bundles_post_ra>
// kernel: tpu_custom_call.1
= control target key start
LH: loop header
LB: loop body
LE: loop exit
PB: predicated region body
PF: predicated region fallthrough
CT: control target
= control target key end

     0   :  { %s3422_s0 = inlined_call_operand.vmem [shape: f32[256,10], index: 0, kind: input, shape index: {}]   ;;  %s3423_s1 = inlined_call_operand.vmem [shape: f32[256,10], index: 1, kind: input, shape index: {}]   ;;  %s3424_s2 = inlined_call_operand.vmem [shape: f32[256,10], index: 2, kind: input, shape index: {}]   ;;  %s3425_s3 = inlined_call_operand.vmem [shape: f32[256,128], index: 3, kind: input, shape index: {}]   ;;  %s3426_s4 = inlined_call_operand.vmem [shape: f32[256,128], index: 4, kind: input, shape index: {}]   ;;  %s3427_s5 = inlined_call_operand.vmem [shape: f32[256,10], index: 5, kind: input, shape index: {}]   ;;  %s3428_s6 = inlined_call_operand.hbm [shape: f32[16,128], index: 6, kind: output, shape index: {}]  }
   0x1   :  { %3442 = sst [smem:[#allocation20_spill]] %s3422_s0 }
   0x2   :  { %3443 = sst [smem:[#allocation21_spill]] %s3423_s1 }
   0x3   :  { %11 = vsyncpa [#allocation4], 0 }
   0x4   :  { %13 = vsyncpa [#allocation4 + $0x1], 0  ;;  %s2468_s21 = smov 0   ;;  %s2470_s22 = smov 0  }
   0x5   :  { %s2472_s23 = smov 0   ;;  %s2474_s24 = smov 0  }
   0x6   :  { %s2476_s25 = smov 0   ;;  %s2478_s26 = smov 0  }
   0x7   :  { %s2480_s27 = smov 0   ;;  %s2482_s28 = smov 0  }
   0x8 LB: > { %3444 = sst [smem:[#allocation6_spill]] %s2422_s26  ;;  %s1844_s29 = sadd.s32 4294967295, %s2430_s28   ;;  %s2430_s28 = sphi %s2482_s28, %s19_s28   ;;  %s2426_s27 = sphi %s2480_s27, %s3476_s27   ;;  %s2422_s26 = sphi %s2478_s26, %s3475_s26   ;;  %s2418_s25 = sphi %s2476_s25, %s3474_s25   ;;  %s2414_s24 = sphi %s2474_s24, %s3473_s24   ;;  %s2410_s23 = sphi %s2472_s23, %s3479_s23   ;;  %s2406_s22 = sphi %s2470_s22, %s3478_s22   ;;  %s2402_s21 = sphi %s2468_s21, %s3477_s21  }
   0x9   : > { %3445 = sst [smem:[#allocation7_spill]] %s2426_s27  ;;  %s1845_s30 = sadd.s32 4294967294, %s2430_s28  }
   0xa   : > { %s28_s7 = sadd.s32 1, %s2422_s26  ;;  %s31_s8 = sadd.s32 1, %s2426_s27 }
   0xb   : > { %p29_p0 = scmp.ge.s32.totalorder %s28_s7, 2  ;;  %p204_p1 = scmp.ne.s32.totalorder %s2410_s23, %s2406_s22 }
   0xc   : > { %p205_p2 = scmp.eq.s32.totalorder %s1844_s29, 3  ;;  %p210_p4 = scmp.ne.s32.totalorder %s2406_s22, %s2402_s21 }
   0xd   : > { %s3481_s7 = smov (%p29_p0, %s28_s7), 0  ;;  %s3483_s8 = smov (!%p29_p0, %s31_s8), %s2426_s27 }
   0xe   : > { %3446 = sst [smem:[#allocation8_spill]] %s3481_s7  ;;  %p2517_p3 = por %p205_p2, %p204_p1 }
   0xf   : > { %p33_p5 = scmp.ge.s32.totalorder %s3483_s8, 2  ;;  %p211_p6 = scmp.eq.s32.totalorder %s1845_s30, 3 }
  0x10   : > { %p1848_p7 = scmp.ge.s32.totalorder %s2430_s28, 1  ;;  %p283_p8 = scmp.lt.s32.totalorder %s2430_s28, 5 }
  0x11   : > { %s3485_s8 = smov (%p33_p5, %s3483_s8), 0  ;;  %p2527_p9 = por %p211_p6, %p210_p4 }
  0x12   : > { %3448 = sst [smem:[#allocation9_spill]] %s3485_s8  ;;  %p284_p10 = pnand %p1848_p7, %p283_p8 }
  0x13   : > { %s191_s11 = ssub.s32 %s2426_s27, %s3485_s8  ;;  %s194_s12 = sadd.s32 1, %s2410_s23 }
  0x14   : > { %p192_p11 = scmp.eq.s32.totalorder %s191_s11, 0  ;;  %287 = sbr.rel (%p284_p10) target bundleno = 891 (0x37b), region = 44 }
  0x15   : > { %s3431_s14 = sand.u32 (!%p284_p10), 1, %s2406_s22   ;;  %s1850_s15 = sshll.u32 (!%p284_p10), %s2418_s25, 4 }
  0x16   : > { %s2535_s13 = scalar_select %p192_p11, %s2410_s23, %s194_s12  }
  0x17   : > { %s1849_s16 = sshll.u32 (!%p284_p10), %s3431_s14, 3  ;;  %p339_p12 = scmp.lt.s32.totalorder (!%p284_p10), %s1850_s15, 31 }
  0x18   : > { %3450 = sst [smem:[#allocation10_spill]] %s2535_s13  ;;  %s1858_s17 = sshll.u32 (!%p284_p10), %s2414_s24, 4 }
  0x19   : > { %s3487_s15 = smov (!%p339_p12, %s1850_s15), 31  ;;  %p363_p13 = scmp.lt.s32.totalorder %s1858_s17, 31 }
  0x1a   : > { %s1851_s18 = sshll.u32 %s3487_s15, 3  ;;  %s3451_s0 = sld [smem:[#allocation20_spill]] }
  0x1b   : > { %s3452_s1 = sld [smem:[#allocation21_spill]]  ;;  %s2555_s27 = scalar_lea.vmem %s3424_s2, %s1851_s18 }
  0x1c   : > { %s2560_s13 = scalar_lea.vmem %s3425_s3, %s1851_s18  ;;  %s3489_s17 = smov (!%p363_p13, %s1858_s17), 31 }
  0x1d   : > { %s1859_s15 = sshll.u32 %s3489_s17, 3  ;;  %s2572_s7 = scalar_lea.vmem [#allocation3], %s1849_s16 }
  0x1e   : > { %p1862_p0 = scmp.ne.s32.totalorder %s2414_s24, 0 }
  0x20   : > { %s2545_s29 = scalar_lea.vmem %s3451_s0, %s1851_s18  ;;  %s2565_s0 = scalar_lea.vmem %s3426_s4, %s1859_s15 }
  0x21   : > { %s2550_s12 = scalar_lea.vmem %s3452_s1, %s1851_s18  ;;  %s2570_s1 = scalar_lea.vmem %s3427_s5, %s1859_s15 }
  0x22   : > { %377 = sbr.rel (%p1862_p0) target bundleno = 402 (0x192), region = 48 }
  0x27   : > { %v2576_v0 = vld [vmem:[%s2545_s29] sm:$0xff]  ;;  %vm410_vm0 = vcmask 80896   ;;  %v2579_v1 = vld [vmem:[%s2545_s29 + $0x10] sm:$0xff]  ;;  %v2582_v2 = vld [vmem:[%s2545_s29 + $0x8] sm:$0xff] }
  0x28   : > { %v411_v3 = vsel %vm410_vm0, %v2576_v0, -inf  ;;  %v417_v4 = vsel %vm410_vm0, %v2579_v1, -inf  ;;  %v2589_v5 = vld [vmem:[%s2545_s29 + $0x18] sm:$0xff]  ;;  %v414_v6 = vsel %vm410_vm0, %v2582_v2, -inf  ;;  %v2596_v8 = vld [vmem:[%s2545_s29 + $0x20] sm:$0xff]  ;;  %v2599_v9 = vld [vmem:[%s2545_s29 + $0x28] sm:$0xff] }
  0x29   : > { %412 = vmax.xlane.f32.xlu0 %v411_v3  ;;  %418 = vmax.xlane.f32.xlu1 %v417_v4  ;;  %v420_v7 = vsel %vm410_vm0, %v2589_v5, -inf  ;;  %v423_v10 = vsel %vm410_vm0, %v2596_v8, -inf  ;;  %v426_v11 = vsel %vm410_vm0, %v2599_v9, -inf  ;;  %v2606_v12 = vld [vmem:[%s2545_s29 + $0x30] sm:$0xff]  ;;  %v2609_v13 = vld [vmem:[%s2545_s29 + $0x38] sm:$0xff]  ;;  %v2616_v16 = vld [vmem:[%s2545_s29 + $0x40] sm:$0xff] }
  0x2a   : > { %v429_v14 = vsel %vm410_vm0, %v2606_v12, -inf  ;;  %v432_v15 = vsel %vm410_vm0, %v2609_v13, -inf  ;;  %v2619_v17 = vld [vmem:[%s2545_s29 + $0x48] sm:$0xff]  ;;  %v435_v18 = vsel %vm410_vm0, %v2616_v16, -inf  ;;  %v2626_v20 = vld [vmem:[%s2545_s29 + $0x50] sm:$0xff]  ;;  %v2629_v21 = vld [vmem:[%s2545_s29 + $0x58] sm:$0xff] }
  0x2b   : > { %v438_v19 = vsel %vm410_vm0, %v2619_v17, -inf  ;;  %v441_v22 = vsel %vm410_vm0, %v2626_v20, -inf  ;;  %v444_v23 = vsel %vm410_vm0, %v2629_v21, -inf  ;;  %v2636_v24 = vld [vmem:[%s2545_s29 + $0x60] sm:$0xff]  ;;  %v2639_v25 = vld [vmem:[%s2545_s29 + $0x68] sm:$0xff]  ;;  %v2646_v28 = vld [vmem:[%s2545_s29 + $0x70] sm:$0xff] }
  0x2c   : > { %v447_v26 = vsel %vm410_vm0, %v2636_v24, -inf  ;;  %v450_v27 = vsel %vm410_vm0, %v2639_v25, -inf  ;;  %v2649_v29 = vld [vmem:[%s2545_s29 + $0x78] sm:$0xff]  ;;  %v453_v30 = vsel %vm410_vm0, %v2646_v28, -inf  ;;  %v2656_v32 = vld [vmem:[%s2560_s13 + $0x8] sm:$0xff]  ;;  %v2659_v33 = vld [vmem:[%s2560_s13] sm:$0xff] }
  0x2d   : > { %415 = vmax.xlane.f32.xlu0 %v414_v6  ;;  %421 = vmax.xlane.f32.xlu1 %v420_v7  ;;  %v456_v31 = vsel %vm410_vm0, %v2649_v29, -inf  ;;  %v720_v34 = vmul.f32 %v2656_v32, %v2656_v32  ;;  %v719_v35 = vmul.f32 %v2659_v33, %v2659_v33  ;;  %v2666_v36 = vld [vmem:[%s2560_s13 + $0x18] sm:$0xff]  ;;  %v2669_v37 = vld [vmem:[%s2560_s13 + $0x10] sm:$0xff]  ;;  %v2676_v40 = vld [vmem:[%s2560_s13 + $0x28] sm:$0xff] }
  0x2e   : > { %v722_v38 = vmul.f32 %v2666_v36, %v2666_v36  ;;  %v721_v39 = vmul.f32 %v2669_v37, %v2669_v37  ;;  %v2679_v41 = vld [vmem:[%s2560_s13 + $0x20] sm:$0xff]  ;;  %v724_v42 = vmul.f32 %v2676_v40, %v2676_v40  ;;  %v2686_v44 = vld [vmem:[%s2560_s13 + $0x38] sm:$0xff]  ;;  %v2689_v45 = vld [vmem:[%s2560_s13 + $0x30] sm:$0xff] }
  0x2f   : > { %v723_v43 = vmul.f32 %v2679_v41, %v2679_v41  ;;  %v726_v46 = vmul.f32 %v2686_v44, %v2686_v44  ;;  %v725_v47 = vmul.f32 %v2689_v45, %v2689_v45  ;;  %v2696_v48 = vld [vmem:[%s2560_s13 + $0x48] sm:$0xff]  ;;  %v2699_v49 = vld [vmem:[%s2560_s13 + $0x40] sm:$0xff]  ;;  %v2706_v52 = vld [vmem:[%s2560_s13 + $0x58] sm:$0xff] }
  0x30   : > { %v728_v50 = vmul.f32 %v2696_v48, %v2696_v48  ;;  %v727_v51 = vmul.f32 %v2699_v49, %v2699_v49  ;;  %v2709_v53 = vld [vmem:[%s2560_s13 + $0x50] sm:$0xff]  ;;  %v730_v54 = vmul.f32 %v2706_v52, %v2706_v52  ;;  %v2716_v56 = vld [vmem:[%s2560_s13 + $0x68] sm:$0xff]  ;;  %v2719_v57 = vld [vmem:[%s2560_s13 + $0x60] sm:$0xff] }
  0x31   : > { %424 = vmax.xlane.f32.xlu0 %v423_v10  ;;  %427 = vmax.xlane.f32.xlu1 %v426_v11  ;;  %v729_v55 = vmul.f32 %v2709_v53, %v2709_v53  ;;  %v732_v58 = vmul.f32 %v2716_v56, %v2716_v56  ;;  %v731_v59 = vmul.f32 %v2719_v57, %v2719_v57  ;;  %v2726_v60 = vld [vmem:[%s2560_s13 + $0x78] sm:$0xff]  ;;  %v2729_v61 = vld [vmem:[%s2560_s13 + $0x70] sm:$0xff]  ;;  %v395_v62 = vld [vmem:[%s2550_s12 + $0x8] sm:$0xff] }
  0x32   : > { %v394_v63 = vld [vmem:[%s2550_s12] sm:$0xff]  ;;  %v734_v3 = vmul.f32 %v2726_v60, %v2726_v60  ;;  %v733_v4 = vmul.f32 %v2729_v61, %v2729_v61  ;;  %v604_v6 = vmul.f32 %v395_v62, %v2582_v2  ;;  %v396_v10 = vld [vmem:[%s2550_s12 + $0x10] sm:$0xff] }
  0x33   : > { %v603_v7 = vmul.f32 %v394_v63, %v2576_v0 }
  0x34   : > { %v622_v11 = vsel %vm410_vm0, %v604_v6, 0.0 }
  0x35   : > { %430 = vmax.xlane.f32.xlu0 %v429_v14  ;;  %433 = vmax.xlane.f32.xlu1 %v432_v15  ;;  %v605_v14 = vmul.f32 %v396_v10, %v2579_v1  ;;  %v619_v15 = vsel %vm410_vm0, %v603_v7, 0.0 }
  0x39   : > { %436 = vmax.xlane.f32.xlu0 %v435_v18  ;;  %439 = vmax.xlane.f32.xlu1 %v438_v19  ;;  %v397_v18 = vld [vmem:[%s2550_s12 + $0x18] sm:$0xff]  ;;  %v625_v19 = vsel %vm410_vm0, %v605_v14, 0.0 }
  0x3d   : > { %442 = vmax.xlane.f32.xlu0 %v441_v22  ;;  %445 = vmax.xlane.f32.xlu1 %v444_v23  ;;  %v606_v22 = vmul.f32 %v397_v18, %v2589_v5 }
  0x3f   : > { %v628_v23 = vsel %vm410_vm0, %v606_v22, 0.0 }
  0x41   : > { %448 = vmax.xlane.f32.xlu0 %v447_v26  ;;  %451 = vmax.xlane.f32.xlu1 %v450_v27 }
  0x45   : > { %454 = vmax.xlane.f32.xlu0 %v453_v30  ;;  %457 = vmax.xlane.f32.xlu1 %v456_v31 }
  0x49   : > { %737 = vadd.xlane.f32.xlu0 %v720_v34  ;;  %735 = vadd.xlane.f32.xlu1 %v719_v35 }
  0x4d   : > { %741 = vadd.xlane.f32.xlu0 %v722_v38  ;;  %739 = vadd.xlane.f32.xlu1 %v721_v39 }
  0x51   : > { %745 = vadd.xlane.f32.xlu0 %v724_v42  ;;  %743 = vadd.xlane.f32.xlu1 %v723_v43 }
  0x55   : > { %749 = vadd.xlane.f32.xlu0 %v726_v46  ;;  %747 = vadd.xlane.f32.xlu1 %v725_v47 }
  0x59   : > { %753 = vadd.xlane.f32.xlu0 %v728_v50  ;;  %751 = vadd.xlane.f32.xlu1 %v727_v51 }
  0x5d   : > { %757 = vadd.xlane.f32.xlu0 %v730_v54  ;;  %755 = vadd.xlane.f32.xlu1 %v729_v55 }
  0x61   : > { %761 = vadd.xlane.f32.xlu0 %v732_v58  ;;  %759 = vadd.xlane.f32.xlu1 %v731_v59 }
  0x65   : > { %765 = vadd.xlane.f32.xlu0 %v734_v3  ;;  %763 = vadd.xlane.f32.xlu1 %v733_v4 }
  0x69   : > { %623 = vadd.xlane.f32.xlu0 %v622_v11  ;;  %620 = vadd.xlane.f32.xlu1 %v619_v15 }
  0x6d   : > { %626 = vadd.xlane.f32.xlu0 %v625_v19 }
  0x71   : > { %629 = vadd.xlane.f32.xlu0 %v628_v23 }
  0xb2   : > { %v2747_v26 = vpop.xlane.xlu0 %412  ;;  %v2749_v27 = vpop.xlane.xlu1 %418 }
  0xb3   : > { %v459_v30 = vsub.f32 %v2576_v0, %v2747_v26  ;;  %v461_v31 = vsub.f32 %v2579_v1, %v2749_v27 }
  0xb5   : > { %v475_v34 = vmul.f32 1.442695, %v459_v30  ;;  %v479_v35 = vmul.f32 1.442695, %v461_v31 }
  0xb6   : > { %v2755_v38 = vpop.xlane.xlu0 %415  ;;  %v2757_v39 = vpop.xlane.xlu1 %421 }
  0xb7   : > { %2146 = vpow2.f32 %v475_v34  ;;  %v460_v42 = vsub.f32 %v2582_v2, %v2755_v38  ;;  %v462_v43 = vsub.f32 %v2589_v5, %v2757_v39 }
  0xb8   : > { %2148 = vpow2.f32 %v479_v35 }
  0xb9   : > { %v477_v46 = vmul.f32 1.442695, %v460_v42  ;;  %v481_v47 = vmul.f32 1.442695, %v462_v43 }
  0xba   : > { %v2763_v0 = vpop.xlane.xlu0 %424  ;;  %v2765_v50 = vpop.xlane.xlu1 %427 }
  0xbb   : > { %2150 = vpow2.f32 %v477_v46  ;;  %v463_v1 = vsub.f32 %v2596_v8, %v2763_v0  ;;  %v464_v51 = vsub.f32 %v2599_v9, %v2765_v50 }
  0xbc   : > { %2152 = vpow2.f32 %v481_v47 }
  0xbd   : > { %v483_v54 = vmul.f32 1.442695, %v463_v1  ;;  %v485_v2 = vmul.f32 1.442695, %v464_v51 }
  0xbe   : > { %v2771_v55 = vpop.xlane.xlu0 %430  ;;  %v2773_v5 = vpop.xlane.xlu1 %433 }
  0xbf   : > { %3453 = vst [vmem:[#allocation11_spill] sm:$0xff] %v2773_v5  ;;  %2154 = vpow2.f32 %v483_v54  ;;  %v465_v58 = vsub.f32 %v2606_v12, %v2771_v55  ;;  %v466_v59 = vsub.f32 %v2609_v13, %v2773_v5 }
  0xc0   : > { %2156 = vpow2.f32 %v485_v2 }
  0xc1   : > { %v487_v62 = vmul.f32 1.442695, %v465_v58  ;;  %v489_v63 = vmul.f32 1.442695, %v466_v59 }
  0xc2   : > { %v2779_v3 = vpop.xlane.xlu0 %436  ;;  %v2781_v4 = vpop.xlane.xlu1 %439 }
  0xc3   : > { %3454 = vst [vmem:[#allocation12_spill] sm:$0xff] %v2779_v3  ;;  %3455 = vst [vmem:[#allocation13_spill] sm:$0xff] %v2781_v4  ;;  %2158 = vpow2.f32 %v487_v62  ;;  %v467_v6 = vsub.f32 %v2616_v16, %v2779_v3  ;;  %v468_v7 = vsub.f32 %v2619_v17, %v2781_v4 }
  0xc4   : > { %v2147_v10 = vpop.eup %2146  ;;  %2160 = vpow2.f32 %v489_v63 }
  0xc5   : > { %v2149_v11 = vpop.eup %2148  ;;  %v491_v14 = vmul.f32 1.442695, %v467_v6  ;;  %v493_v15 = vmul.f32 1.442695, %v468_v7  ;;  %v507_v18 = vsel %vm410_vm0, %v2147_v10, 0.0 }
  0xc6   : > { %508 = vadd.xlane.f32.xlu0 %v507_v18  ;;  %v2788_v19 = vpop.xlane.xlu0 %442  ;;  %v2790_v22 = vpop.xlane.xlu1 %445  ;;  %v513_v31 = vsel %vm410_vm0, %v2149_v11, 0.0 }
  0xc7   : > { %3456 = vst [vmem:[#allocation14_spill] sm:$0xff] %v2788_v19  ;;  %3457 = vst [vmem:[#allocation15_spill] sm:$0xff] %v2790_v22  ;;  %2162 = vpow2.f32 %v491_v14  ;;  %v469_v23 = vsub.f32 %v2626_v20, %v2788_v19  ;;  %v470_v30 = vsub.f32 %v2629_v21, %v2790_v22 }
  0xc8   : > { %v2151_v34 = vpop.eup %2150  ;;  %2164 = vpow2.f32 %v493_v15 }
  0xc9   : > { %v2153_v35 = vpop.eup %2152  ;;  %v495_v42 = vmul.f32 1.442695, %v469_v23  ;;  %v497_v43 = vmul.f32 1.442695, %v470_v30  ;;  %v510_v46 = vsel %vm410_vm0, %v2151_v34, 0.0 }
  0xca   : > { %514 = vadd.xlane.f32.xlu0 %v513_v31  ;;  %511 = vadd.xlane.f32.xlu1 %v510_v46  ;;  %v2798_v47 = vpop.xlane.xlu0 %448  ;;  %v2800_v1 = vpop.xlane.xlu1 %451  ;;  %v516_v51 = vsel %vm410_vm0, %v2153_v35, 0.0  ;;  %v398_v46 = vld [vmem:[%s2550_s12 + $0x20] sm:$0xff] }
  0xcb   : > { %3458 = vst [vmem:[#allocation16_spill] sm:$0xff] %v2798_v47  ;;  %3459 = vst [vmem:[#allocation17_spill] sm:$0xff] %v2800_v1  ;;  %2166 = vpow2.f32 %v495_v42  ;;  %v471_v54 = vsub.f32 %v2636_v24, %v2798_v47  ;;  %v472_v2 = vsub.f32 %v2639_v25, %v2800_v1 }
  0xcc   : > { %v2155_v58 = vpop.eup %2154  ;;  %2168 = vpow2.f32 %v497_v43 }
  0xcd   : > { %v2157_v59 = vpop.eup %2156  ;;  %v519_v62 = vsel %vm410_vm0, %v2155_v58, 0.0  ;;  %v499_v63 = vmul.f32 1.442695, %v471_v54  ;;  %v501_v10 = vmul.f32 1.442695, %v472_v2  ;;  %v400_v58 = vld [vmem:[%s2550_s12 + $0x30] sm:$0xff] }
  0xce   : > { %517 = vadd.xlane.f32.xlu1 %v516_v51  ;;  %520 = vadd.xlane.f32.xlu0 %v519_v62  ;;  %v2808_v6 = vpop.xlane.xlu0 %454  ;;  %v2810_v7 = vpop.xlane.xlu1 %457  ;;  %v522_v11 = vsel %vm410_vm0, %v2157_v59, 0.0  ;;  %v399_v51 = vld [vmem:[%s2550_s12 + $0x28] sm:$0xff]  ;;  %v402_v59 = vld [vmem:[%s2550_s12 + $0x40] sm:$0xff]  ;;  %v404_v62 = vld [vmem:[%s2550_s12 + $0x50] sm:$0xff] }
  0xcf   : > { %3460 = vst [vmem:[#allocation18_spill] sm:$0xff] %v2808_v6  ;;  %3461 = vst [vmem:[#allocation19_spill] sm:$0xff] %v2810_v7  ;;  %2170 = vpow2.f32 %v499_v63  ;;  %v473_v14 = vsub.f32 %v2646_v28, %v2808_v6  ;;  %v474_v31 = vsub.f32 %v2649_v29, %v2810_v7  ;;  %v408_v7 = vld [vmem:[%s2550_s12 + $0x70] sm:$0xff]  ;;  %v613_v1 = vmul.f32 %v404_v62, %v2626_v20 }
  0xd0   : > { %v2159_v15 = vpop.eup %2158  ;;  %2172 = vpow2.f32 %v501_v10  ;;  %v401_v10 = vld [vmem:[%s2550_s12 + $0x38] sm:$0xff] }
  0xd1   : > { %v2161_v18 = vpop.eup %2160  ;;  %v525_v23 = vsel %vm410_vm0, %v2159_v15, 0.0  ;;  %v503_v30 = vmul.f32 1.442695, %v473_v14  ;;  %v505_v63 = vmul.f32 1.442695, %v474_v31  ;;  %v403_v14 = vld [vmem:[%s2550_s12 + $0x48] sm:$0xff] }
  0xd2   : > { %523 = vadd.xlane.f32.xlu1 %v522_v11  ;;  %526 = vadd.xlane.f32.xlu0 %v525_v23  ;;  %v2818_v34 = vpop.xlane.xlu0 %737  ;;  %v2820_v35 = vpop.xlane.xlu1 %735  ;;  %v528_v42 = vsel %vm410_vm0, %v2161_v18, 0.0  ;;  %v406_v11 = vld [vmem:[%s2550_s12 + $0x60] sm:$0xff] }
  0xd3   : > { %2174 = vpow2.f32 %v503_v30  ;;  %v607_v30 = vmul.f32 %v398_v46, %v2596_v8  ;;  %v610_v8 = vmul.f32 %v401_v10, %v2609_v13  ;;  %v612_v46 = vmul.f32 %v403_v14, %v2619_v17 }
  0xd4   : > { %v2163_v43 = vpop.eup %2162  ;;  %2176 = vrsqrt.f32 %v2818_v34  ;;  %vm776_vm1 = vcmp.eq.f32.partialorder %v2818_v34, inf  ;;  %vm778_vm2 = vcmp.eq.f32.partialorder %v2818_v34, 0.0  ;;  %vm769_vm3 = vcmp.eq.f32.partialorder %v2820_v35, inf }
  0xd5   : > { %v2165_v54 = vpop.eup %2164  ;;  %v531_v2 = vsel %vm410_vm0, %v2163_v43, 0.0  ;;  %2178 = vrsqrt.f32 %v2820_v35  ;;  %v608_v43 = vmul.f32 %v399_v51, %v2599_v9  ;;  %v615_v9 = vmul.f32 %v406_v11, %v2636_v24  ;;  %v405_v51 = vld [vmem:[%s2550_s12 + $0x58] sm:$0xff] }
  0xd6   : > { %529 = vadd.xlane.f32.xlu1 %v528_v42  ;;  %532 = vadd.xlane.f32.xlu0 %v531_v2  ;;  %v2834_v15 = vpop.xlane.xlu0 %741  ;;  %v2836_v18 = vpop.xlane.xlu1 %739  ;;  %v534_v23 = vsel %vm410_vm0, %v2165_v54, 0.0  ;;  %v609_v42 = vmul.f32 %v400_v58, %v2606_v12  ;;  %v611_v2 = vmul.f32 %v402_v59, %v2616_v16  ;;  %v617_v12 = vmul.f32 %v408_v7, %v2646_v28 }
  0xd7   : > { %2180 = vrsqrt.f32 %v2834_v15  ;;  %v631_v59 = vsel %vm410_vm0, %v607_v30, 0.0  ;;  %v634_v13 = vsel %vm410_vm0, %v608_v43, 0.0  ;;  %v2866_v28 = vsel %vm410_vm0, %v613_v1, 0.0 }
  0xd8   : > { %v2167_v31 = vpop.eup %2166  ;;  %2182 = vrsqrt.f32 %v2836_v18  ;;  %v637_v17 = vsel %vm410_vm0, %v609_v42, 0.0  ;;  %v2863_v62 = vsel %vm410_vm0, %v611_v2, 0.0  ;;  %v2870_v7 = vsel %vm410_vm0, %v610_v8, 0.0 }
  0xd9   : > { %v2169_v6 = vpop.eup %2168  ;;  %v537_v54 = vsel %vm410_vm0, %v2167_v31, 0.0  ;;  %2184 = vpow2.f32 %v505_v63  ;;  %v2876_v63 = vsel %vm410_vm0, %v612_v46, 0.0  ;;  %v2879_v10 = vmul.f32 %v405_v51, %v2629_v21 }
  0xda   : > { %535 = vadd.xlane.f32.xlu1 %v534_v23  ;;  %538 = vadd.xlane.f32.xlu0 %v537_v54  ;;  %v2853_v16 = vpop.xlane.xlu0 %745  ;;  %v2855_v20 = vpop.xlane.xlu1 %743  ;;  %v540_v58 = vsel %vm410_vm0, %v2169_v6, 0.0  ;;  %v2873_v6 = vsel %vm410_vm0, %v615_v9, 0.0  ;;  %v2882_v11 = vsel %vm410_vm0, %v617_v12, 0.0  ;;  %v779_v1 = vand.u32 2147483648, %v2818_v34 }
  0xdb   : > { %2186 = vrsqrt.f32 %v2853_v16  ;;  %vm771_vm4 = vcmp.eq.f32.partialorder %v2820_v35, 0.0  ;;  %v772_v43 = vand.u32 2147483648, %v2820_v35  ;;  %vm790_vm5 = vcmp.eq.f32.partialorder %v2834_v15, inf }
  0xdc   : > { %v2171_v24 = vpop.eup %2170  ;;  %2188 = vrsqrt.f32 %v2855_v20  ;;  %vm792_vm6 = vcmp.eq.f32.partialorder %v2834_v15, 0.0  ;;  %v793_v42 = vand.u32 2147483648, %v2834_v15  ;;  %vm783_vm7 = vcmp.eq.f32.partialorder %v2836_v18, inf }
  0xdd   : > { %v543_v30 = vsel %vm410_vm0, %v2171_v24, 0.0  ;;  %v2173_v21 = vpop.eup %2172  ;;  %vm785_vm8 = vcmp.eq.f32.partialorder %v2836_v18, 0.0  ;;  %v786_v2 = vand.u32 2147483648, %v2836_v18  ;;  %vm804_vm9 = vcmp.eq.f32.partialorder %v2853_v16, inf }
  0xde   : > { %541 = vadd.xlane.f32.xlu1 %v540_v58  ;;  %632 = vadd.xlane.f32.xlu0 %v631_v59  ;;  %v2887_v14 = vpop.xlane.xlu0 %749  ;;  %v2889_v23 = vpop.xlane.xlu1 %747  ;;  %vm806_vm10 = vcmp.eq.f32.partialorder %v2853_v16, 0.0  ;;  %v807_v8 = vand.u32 2147483648, %v2853_v16  ;;  %vm797_vm11 = vcmp.eq.f32.partialorder %v2855_v20, inf  ;;  %v546_v12 = vsel %vm410_vm0, %v2173_v21, 0.0 }
  0xdf   : > { %2190 = vrsqrt.f32 %v2887_v14  ;;  %vm799_vm12 = vcmp.eq.f32.partialorder %v2855_v20, 0.0  ;;  %v800_v24 = vand.u32 2147483648, %v2855_v20  ;;  %vm818_vm13 = vcmp.eq.f32.partialorder %v2887_v14, inf }
  0xe0   : > { %2192 = vrsqrt.f32 %v2889_v23  ;;  %v2175_v31 = vpop.eup %2174  ;;  %vm820_vm14 = vcmp.eq.f32.partialorder %v2887_v14, 0.0  ;;  %v821_v22 = vand.u32 2147483648, %v2887_v14  ;;  %vm811_vm15 = vcmp.eq.f32.partialorder %v2889_v23, inf }
  0xe1   : > { %v2177_v54 = vpop.eup %2176 }
  0xe2   : > { %635 = vadd.xlane.f32.xlu0 %v634_v13  ;;  %544 = vadd.xlane.f32.xlu1 %v543_v30  ;;  %v2907_v9 = vpop.xlane.xlu0 %753  ;;  %v2909_v46 = vpop.xlane.xlu1 %751  ;;  %v775_v58 = vmul.f32 %v2177_v54, %v2818_v34 }
  0xe3   : > { %v2179_v51 = vpop.eup %2178  ;;  %2194 = vrsqrt.f32 %v2907_v9 }
  0xe4   : > { %v2181_v59 = vpop.eup %2180  ;;  %v768_v13 = vmul.f32 %v2179_v51, %v2820_v35  ;;  %2196 = vrsqrt.f32 %v2909_v46  ;;  %v777_v21 = vsel %vm776_vm1, %v2818_v34, %v775_v58  ;;  %v549_v51 = vsel %vm410_vm0, %v2175_v31, 0.0 }
  0xe5   : > { %v2183_v30 = vpop.eup %2182  ;;  %v789_v54 = vmul.f32 %v2181_v59, %v2834_v15  ;;  %v780_v47 = vsel %vm778_vm2, %v779_v1, %v777_v21  ;;  %vm813_vm1 = vcmp.eq.f32.partialorder %v2889_v23, 0.0  ;;  %vm832_vm2 = vcmp.eq.f32.partialorder %v2907_v9, inf }
  0xe6   : > { %638 = vadd.xlane.f32.xlu0 %v637_v17  ;;  %547 = vadd.xlane.f32.xlu1 %v546_v12  ;;  %v770_v19 = vsel %vm769_vm3, %v2820_v35, %v768_v13  ;;  %v782_v4 = vmul.f32 %v2183_v30, %v2836_v18  ;;  %v2932_v58 = vpop.xlane.xlu0 %757  ;;  %v2185_v59 = vpop.eup %2184  ;;  %v880_v3 = vadd.f32 1e-09, %v780_v47  ;;  %vm834_vm3 = vcmp.eq.f32.partialorder %v2907_v9, 0.0 }
  0xe7   : > { %v773_v5 = vsel %vm771_vm4, %v772_v43, %v770_v19  ;;  %v791_v17 = vsel %vm790_vm5, %v2834_v15, %v789_v54  ;;  %2198 = vrsqrt.f32 %v2932_v58  ;;  %v2940_v34 = vpop.xlane.xlu1 %755  ;;  %vm825_vm4 = vcmp.eq.f32.partialorder %v2909_v46, inf }
  0xe8   : > { %v2187_v1 = vpop.eup %2186  ;;  %v879_v31 = vadd.f32 1e-09, %v773_v5  ;;  %v794_v12 = vsel %vm792_vm6, %v793_v42, %v791_v17  ;;  %v784_v47 = vsel %vm783_vm7, %v2836_v18, %v782_v4  ;;  %2200 = vrcp.f32 %v880_v3 }
  0xe9   : > { %v2189_v19 = vpop.eup %2188  ;;  %v882_v35 = vadd.f32 1e-09, %v794_v12  ;;  %v787_v43 = vsel %vm785_vm8, %v786_v2, %v784_v47  ;;  %v803_v13 = vmul.f32 %v2187_v1, %v2853_v16  ;;  %v552_v4 = vsel %vm410_vm0, %v2185_v59, 0.0  ;;  %v407_v1 = vld [vmem:[%s2550_s12 + $0x68] sm:$0xff] }
  0xea   : > { %644 = vadd.xlane.f32.xlu0 %v2863_v62  ;;  %550 = vadd.xlane.f32.xlu1 %v549_v51  ;;  %2202 = vrcp.f32 %v879_v31  ;;  %v881_v5 = vadd.f32 1e-09, %v787_v43  ;;  %v796_v15 = vmul.f32 %v2189_v19, %v2855_v20  ;;  %v814_v18 = vand.u32 2147483648, %v2889_v23  ;;  %v2959_v42 = vpop.xlane.xlu0 %761 }
  0xeb   : > { %2204 = vrcp.f32 %v882_v35  ;;  %v805_v3 = vsel %vm804_vm9, %v2853_v16, %v803_v13  ;;  %v2971_v17 = vpop.xlane.xlu1 %759  ;;  %v828_v47 = vand.u32 2147483648, %v2909_v46  ;;  %vm827_vm5 = vcmp.eq.f32.partialorder %v2909_v46, 0.0 }
  0xec   : > { %v2191_v2 = vpop.eup %2190  ;;  %2206 = vrcp.f32 %v881_v5  ;;  %v808_v62 = vsel %vm806_vm10, %v807_v8, %v805_v3  ;;  %v798_v30 = vsel %vm797_vm11, %v2855_v20, %v796_v15  ;;  %vm846_vm6 = vcmp.eq.f32.partialorder %v2932_v58, inf }
  0xed   : > { %v2193_v21 = vpop.eup %2192  ;;  %v884_v54 = vadd.f32 1e-09, %v808_v62  ;;  %v801_v51 = vsel %vm799_vm12, %v800_v24, %v798_v30  ;;  %v817_v59 = vmul.f32 %v2191_v2, %v2887_v14  ;;  %2208 = vrsqrt.f32 %v2940_v34 }
  0xee   : > { %650 = vadd.xlane.f32.xlu0 %v2866_v28  ;;  %553 = vadd.xlane.f32.xlu1 %v552_v4  ;;  %v883_v16 = vadd.f32 1e-09, %v801_v51  ;;  %v810_v8 = vmul.f32 %v2193_v21, %v2889_v23  ;;  %2210 = vrsqrt.f32 %v2959_v42  ;;  %v835_v24 = vand.u32 2147483648, %v2907_v9  ;;  %v2998_v15 = vpop.xlane.xlu0 %765  ;;  %v409_v21 = vld [vmem:[%s2550_s12 + $0x78] sm:$0xff] }
  0xef   : > { %2212 = vrcp.f32 %v884_v54  ;;  %v819_v20 = vsel %vm818_vm13, %v2887_v14, %v817_v59  ;;  %vm848_vm7 = vcmp.eq.f32.partialorder %v2932_v58, 0.0  ;;  %v849_v3 = vand.u32 2147483648, %v2932_v58 }
  0xf0   : > { %v2195_v31 = vpop.eup %2194  ;;  %2214 = vrcp.f32 %v883_v16  ;;  %v822_v28 = vsel %vm820_vm14, %v821_v22, %v819_v20  ;;  %v812_v12 = vsel %vm811_vm15, %v2889_v23, %v810_v8  ;;  %v616_v22 = vmul.f32 %v407_v1, %v2639_v25 }
  0xf1   : > { %v2197_v19 = vpop.eup %2196  ;;  %v886_v35 = vadd.f32 1e-09, %v822_v28  ;;  %v815_v43 = vsel %vm813_vm1, %v814_v18, %v812_v12  ;;  %v831_v13 = vmul.f32 %v2195_v31, %v2907_v9  ;;  %2216 = vrsqrt.f32 %v2971_v17 }
  0xf2   : > { %641 = vadd.xlane.f32.xlu1 %v2870_v7  ;;  %656 = vadd.xlane.f32.xlu0 %v2873_v6  ;;  %v885_v14 = vadd.f32 1e-09, %v815_v43  ;;  %v824_v5 = vmul.f32 %v2197_v19, %v2909_v46  ;;  %v3005_v7 = vpop.xlane.xlu1 %763  ;;  %v658_v1 = vsel %vm410_vm0, %v616_v22, 0.0  ;;  %v618_v20 = vmul.f32 %v409_v21, %v2649_v29 }
  0xf3   : > { %2218 = vrcp.f32 %v886_v35  ;;  %v833_v23 = vsel %vm832_vm2, %v2907_v9, %v831_v13  ;;  %vm839_vm8 = vcmp.eq.f32.partialorder %v2940_v34, inf  ;;  %vm841_vm9 = vcmp.eq.f32.partialorder %v2940_v34, 0.0 }
  0xf4   : > { %v2199_v25 = vpop.eup %2198  ;;  %2220 = vrcp.f32 %v885_v14  ;;  %v836_v6 = vsel %vm834_vm3, %v835_v24, %v833_v23  ;;  %v826_v4 = vsel %vm825_vm4, %v2909_v46, %v824_v5  ;;  %v652_v46 = vsel %vm410_vm0, %v2879_v10, 0.0 }
  0xf5   : > { %v888_v18 = vadd.f32 1e-09, %v836_v6  ;;  %v829_v2 = vsel %vm827_vm5, %v828_v47, %v826_v4  ;;  %v845_v62 = vmul.f32 %v2199_v25, %v2932_v58  ;;  %2222 = vrsqrt.f32 %v2998_v15  ;;  %v2201_v30 = vpop.eup %2200 }
  0xf6   : > { %647 = vadd.xlane.f32.xlu1 %v2876_v63  ;;  %662 = vadd.xlane.f32.xlu0 %v2882_v11  ;;  %v887_v9 = vadd.f32 1e-09, %v829_v2  ;;  %2224 = vrsqrt.f32 %v3005_v7  ;;  %v898_v51 = vmul.f32 %v2201_v30, %v2656_v32  ;;  %vm860_vm10 = vcmp.eq.f32.partialorder %v2959_v42, inf }
  0xf7   : > { %v2203_v54 = vpop.eup %2202  ;;  %2226 = vrcp.f32 %v888_v18  ;;  %v847_v59 = vsel %vm846_vm6, %v2932_v58, %v845_v62  ;;  %vm862_vm11 = vcmp.eq.f32.partialorder %v2959_v42, 0.0  ;;  %v664_v47 = vsel %vm410_vm0, %v618_v20, 0.0 }
  0xf8   : > { %v2205_v16 = vpop.eup %2204  ;;  %v896_v63 = vmul.f32 %v2203_v54, %v2659_v33  ;;  %2228 = vrcp.f32 %v887_v9  ;;  %v850_v11 = vsel %vm848_vm7, %v849_v3, %v847_v59  ;;  %928 = vst [vmem:[#allocation2] sm:$0xff] %v898_v51  ;;  %v842_v33 = vand.u32 2147483648, %v2940_v34 }
  0xf9   : > { %v2207_v8 = vpop.eup %2206  ;;  %v902_v32 = vmul.f32 %v2205_v16, %v2666_v36  ;;  %v890_v10 = vadd.f32 1e-09, %v850_v11  ;;  %v863_v36 = vand.u32 2147483648, %v2959_v42  ;;  %vm853_vm12 = vcmp.eq.f32.partialorder %v2971_v17, inf }
  0xfa   : > { %v2209_v24 = vpop.eup %2208  ;;  %653 = vadd.xlane.f32.xlu1 %v652_v46  ;;  %927 = vst [vmem:[#allocation2 + $0x30] sm:$0xff] %v896_v63  ;;  %v900_v31 = vmul.f32 %v2207_v8, %v2669_v37  ;;  %v856_v5 = vand.u32 2147483648, %v2971_v17  ;;  %vm855_vm0 = vcmp.eq.f32.partialorder %v2971_v17, 0.0  ;;  %vm874_vm13 = vcmp.eq.f32.partialorder %v2998_v15, inf }
  0xfb   : > { %v2211_v58 = vpop.eup %2210  ;;  %930 = vst [vmem:[#allocation2 + $0x18] sm:$0xff] %v902_v32  ;;  %2230 = vrcp.f32 %v890_v10  ;;  %v838_v29 = vmul.f32 %v2209_v24, %v2940_v34  ;;  %vm876_vm14 = vcmp.eq.f32.partialorder %v2998_v15, 0.0  ;;  %v877_v62 = vand.u32 2147483648, %v2998_v15 }
  0xfc   : > { %v2213_v28 = vpop.eup %2212  ;;  %929 = vst [vmem:[#allocation2 + $0x58] sm:$0xff] %v900_v31  ;;  %v859_v12 = vmul.f32 %v2211_v58, %v2959_v42  ;;  %vm867_vm15 = vcmp.eq.f32.partialorder %v3005_v7, inf  ;;  %v870_v9 = vand.u32 2147483648, %v3005_v7  ;;  %vm869_vm1 = vcmp.eq.f32.partialorder %v3005_v7, 0.0 }
  0xfd   : > { %v2215_v37 = vpop.eup %2214  ;;  %v906_v19 = vmul.f32 %v2213_v28, %v2676_v40  ;;  %v840_v35 = vsel %vm839_vm8, %v2940_v34, %v838_v29  ;;  %v624_v29 = vpop.xlane.xlu0 %623 }
  0xfe   : > { %v2217_v43 = vpop.eup %2216  ;;  %659 = vadd.xlane.f32.xlu1 %v658_v1  ;;  %v904_v13 = vmul.f32 %v2215_v37, %v2679_v41  ;;  %v843_v22 = vsel %vm841_vm9, %v842_v33, %v840_v35  ;;  %v861_v14 = vsel %vm860_vm10, %v2959_v42, %v859_v12 }
  0xff   : > { %932 = vst [vmem:[#allocation2 + $0x68] sm:$0xff] %v906_v19  ;;  %v889_v23 = vadd.f32 1e-09, %v843_v22  ;;  %v864_v40 = vsel %vm862_vm11, %v863_v36, %v861_v14  ;;  %v852_v25 = vmul.f32 %v2217_v43, %v2971_v17 }
 0x100   : > { %v2219_v6 = vpop.eup %2218  ;;  %931 = vst [vmem:[#allocation2 + $0x50] sm:$0xff] %v904_v13  ;;  %v892_v4 = vadd.f32 1e-09, %v864_v40 }
 0x101   : > { %v2221_v41 = vpop.eup %2220  ;;  %v910_v34 = vmul.f32 %v2219_v6, %v2686_v44  ;;  %2232 = vrcp.f32 %v889_v23  ;;  %v854_v42 = vsel %vm853_vm12, %v2971_v17, %v852_v25  ;;  %v627_v36 = vpop.xlane.xlu0 %626 }
 0x102   : > { %v2223_v3 = vpop.eup %2222  ;;  %665 = vadd.xlane.f32.xlu1 %v664_v47  ;;  %v908_v18 = vmul.f32 %v2221_v41, %v2689_v45  ;;  %2234 = vrcp.f32 %v892_v4  ;;  %v857_v2 = vsel %vm855_vm0, %v856_v5, %v854_v42 }
 0x103   : > { %v2225_v30 = vpop.eup %2224  ;;  %934 = vst [vmem:[#allocation2 + $0x48] sm:$0xff] %v910_v34  ;;  %v891_v21 = vadd.f32 1e-09, %v857_v2  ;;  %v873_v44 = vmul.f32 %v2223_v3, %v2998_v15 }
 0x104   : > { %v2227_v17 = vpop.eup %2226  ;;  %933 = vst [vmem:[#allocation2 + $0x8] sm:$0xff] %v908_v18  ;;  %v866_v54 = vmul.f32 %v2225_v30, %v3005_v7 }
 0x105   : > { %v2229_v45 = vpop.eup %2228  ;;  %v914_v46 = vmul.f32 %v2227_v17, %v2696_v48  ;;  %2236 = vrcp.f32 %v891_v21  ;;  %v875_v51 = vsel %vm874_vm13, %v2998_v15, %v873_v44  ;;  %v630_v28 = vpop.xlane.xlu0 %629 }
 0x106   : > { %v912_v59 = vmul.f32 %v2229_v45, %v2699_v49  ;;  %v878_v16 = vsel %vm876_vm14, %v877_v62, %v875_v51  ;;  %v868_v63 = vsel %vm867_vm15, %v3005_v7, %v866_v54 }
 0x107   : > { %936 = vst [vmem:[#allocation2 + $0x20] sm:$0xff] %v914_v46  ;;  %v894_v11 = vadd.f32 1e-09, %v878_v16  ;;  %v871_v8 = vsel %vm869_vm1, %v870_v9, %v868_v63 }
 0x108   : > { %v2231_v1 = vpop.eup %2230  ;;  %935 = vst [vmem:[#allocation2 + $0x40] sm:$0xff] %v912_v59  ;;  %v893_v20 = vadd.f32 1e-09, %v871_v8 }
 0x109   : > { %v918_v48 = vmul.f32 %v2231_v1, %v2706_v52  ;;  %2238 = vrcp.f32 %v894_v11 }
 0x10a   : > { %2240 = vrcp.f32 %v893_v20 }
 0x10b   : > { %938 = vst [vmem:[#allocation2 + $0x38] sm:$0xff] %v918_v48 }
 0x10e   : > { %v2233_v32 = vpop.eup %2232 }
 0x10f   : > { %v2235_v10 = vpop.eup %2234  ;;  %v916_v49 = vmul.f32 %v2233_v32, %v2709_v53  ;;  %v621_v53 = vpop.xlane.xlu1 %620 }
 0x110   : > { %v922_v15 = vmul.f32 %v2235_v10, %v2716_v56 }
 0x111   : > { %937 = vst [vmem:[#allocation2 + $0x10] sm:$0xff] %v916_v49 }
 0x112   : > { %v2237_v24 = vpop.eup %2236  ;;  %940 = vst [vmem:[#allocation2 + $0x70] sm:$0xff] %v922_v15 }
 0x113   : > { %v920_v7 = vmul.f32 %v2237_v24, %v2719_v57 }
 0x115   : > { %939 = vst [vmem:[#allocation2 + $0x60] sm:$0xff] %v920_v7 }
 0x116   : > { %v2239_v31 = vpop.eup %2238 }
 0x117   : > { %v2241_v33 = vpop.eup %2240  ;;  %v926_v58 = vmul.f32 %v2239_v31, %v2726_v60 }
 0x118   : > { %v924_v52 = vmul.f32 %v2241_v33, %v2729_v61 }
 0x119   : > { %942 = vst [vmem:[#allocation2 + $0x28] sm:$0xff] %v926_v58 }
 0x11a   : > { %941 = vst [vmem:[#allocation2 + $0x78] sm:$0xff] %v924_v52 }
 0x14f   : > { %v509_v12 = vpop.xlane.xlu0 %508 }
 0x150   : > { %2242 = vlog2.f32 %v509_v12 }
 0x153   : > { %v512_v56 = vpop.xlane.xlu1 %511  ;;  %v515_v37 = vpop.xlane.xlu0 %514 }
 0x154   : > { %2244 = vlog2.f32 %v512_v56 }
 0x155   : > { %2246 = vlog2.f32 %v515_v37 }
 0x157   : > { %v518_v57 = vpop.xlane.xlu1 %517  ;;  %v521_v47 = vpop.xlane.xlu0 %520 }
 0x158   : > { %2248 = vlog2.f32 %v518_v57 }
 0x159   : > { %2250 = vlog2.f32 %v521_v47  ;;  %v3463_v47 = vld [vmem:[#allocation12_spill] sm:$0xff] }
 0x15b   : > { %v524_v19 = vpop.xlane.xlu1 %523  ;;  %v527_v60 = vpop.xlane.xlu0 %526 }
 0x15c   : > { %2252 = vlog2.f32 %v524_v19 }
 0x15d   : > { %v2243_v61 = vpop.eup %2242  ;;  %2254 = vlog2.f32 %v527_v60 }
 0x15e   : > { %v556_v35 = vmul.f32 0.6931472, %v2243_v61 }
 0x15f   : > { %v530_v43 = vpop.xlane.xlu1 %529  ;;  %v533_v13 = vpop.xlane.xlu0 %532 }
 0x160   : > { %v587_v5 = vadd.f32 %v556_v35, %v2747_v26  ;;  %2256 = vlog2.f32 %v530_v43 }
 0x161   : > { %v2245_v22 = vpop.eup %2244  ;;  %2258 = vlog2.f32 %v533_v13 }
 0x162   : > { %v2247_v14 = vpop.eup %2246  ;;  %v558_v23 = vmul.f32 0.6931472, %v2245_v22  ;;  %v667_v34 = vsub.f32 %v587_v5, %v621_v53  ;;  %v3464_v22 = vld [vmem:[#allocation13_spill] sm:$0xff] }
 0x163   : > { %v560_v40 = vmul.f32 0.6931472, %v2247_v14  ;;  %v536_v25 = vpop.xlane.xlu1 %535  ;;  %v539_v6 = vpop.xlane.xlu0 %538 }
 0x164   : > { %v588_v4 = vadd.f32 %v558_v23, %v2755_v38  ;;  %2260 = vlog2.f32 %v536_v25  ;;  %v3465_v23 = vld [vmem:[#allocation14_spill] sm:$0xff] }
 0x165   : > { %v2249_v41 = vpop.eup %2248  ;;  %v589_v3 = vadd.f32 %v560_v40, %v2749_v27  ;;  %2262 = vlog2.f32 %v539_v6 }
 0x166   : > { %v668_v42 = vsub.f32 %v588_v4, %v624_v29  ;;  %v562_v18 = vmul.f32 0.6931472, %v2249_v41  ;;  %v2251_v2 = vpop.eup %2250 }
 0x167   : > { %v542_v62 = vpop.xlane.xlu1 %541  ;;  %v633_v30 = vpop.xlane.xlu0 %632  ;;  %v669_v9 = vsub.f32 %v589_v3, %v627_v36  ;;  %v564_v17 = vmul.f32 0.6931472, %v2251_v2 }
 0x168   : > { %v590_v21 = vadd.f32 %v562_v18, %v2757_v39  ;;  %v683_v26 = vadd.f32 %v668_v42, %v667_v34  ;;  %v3466_v42 = vld [vmem:[#allocation16_spill] sm:$0xff] }
 0x169   : > { %v2253_v44 = vpop.eup %2252  ;;  %v591_v27 = vadd.f32 %v564_v17, %v2763_v0 }
 0x16a   : > { %v566_v54 = vmul.f32 0.6931472, %v2253_v44  ;;  %v670_v45 = vsub.f32 %v590_v21, %v630_v28  ;;  %v684_v46 = vadd.f32 %v683_v26, %v669_v9  ;;  %v2255_v59 = vpop.eup %2254  ;;  %v3462_v28 = vld [vmem:[#allocation11_spill] sm:$0xff] }
 0x16b   : > { %v545_v38 = vpop.xlane.xlu1 %544  ;;  %v636_v51 = vpop.xlane.xlu0 %635  ;;  %v568_v8 = vmul.f32 0.6931472, %v2255_v59  ;;  %v671_v1 = vsub.f32 %v591_v27, %v633_v30  ;;  %v3467_v21 = vld [vmem:[#allocation15_spill] sm:$0xff]  ;;  %v3468_v27 = vld [vmem:[#allocation18_spill] sm:$0xff] }
 0x16c   : > { %2264 = vlog2.f32 %v545_v38  ;;  %v685_v63 = vadd.f32 %v684_v46, %v670_v45  ;;  %v592_v39 = vadd.f32 %v566_v54, %v2765_v50  ;;  %v698_v45 = vlaneseq }
 0x16d   : > { %2266 = vlog2.f32 %v542_v62  ;;  %v2257_v11 = vpop.eup %2256  ;;  %v593_v24 = vadd.f32 %v568_v8, %v2771_v55 }
 0x16e   : > { %v686_v32 = vadd.f32 %v685_v63, %v671_v1  ;;  %v672_v10 = vsub.f32 %v592_v39, %v636_v51  ;;  %v2259_v49 = vpop.eup %2258  ;;  %v570_v15 = vmul.f32 0.6931472, %v2257_v11 }
 0x16f   : > { %v548_v16 = vpop.xlane.xlu1 %547  ;;  %v639_v20 = vpop.xlane.xlu0 %638  ;;  %v572_v33 = vmul.f32 0.6931472, %v2259_v49 }
 0x170   : > { %2268 = vlog2.f32 %v548_v16  ;;  %v687_v58 = vadd.f32 %v686_v32, %v672_v10  ;;  %v673_v52 = vsub.f32 %v593_v24, %v639_v20  ;;  %v594_v53 = vadd.f32 %v570_v15, %v3462_v28  ;;  %v3469_v16 = vld [vmem:[#allocation17_spill] sm:$0xff]  ;;  %v3470_v10 = vld [vmem:[#allocation19_spill] sm:$0xff] }
 0x171   : > { %v2261_v7 = vpop.eup %2260  ;;  %v595_v19 = vadd.f32 %v572_v33, %v3463_v47  ;;  %v699_v20 = vand.u32 127, %v698_v45 }
 0x172   : > { %v2263_v31 = vpop.eup %2262  ;;  %v574_v36 = vmul.f32 0.6931472, %v2261_v7  ;;  %v688_v57 = vadd.f32 %v687_v58, %v673_v52 }
 0x173   : > { %v551_v48 = vpop.xlane.xlu1 %550  ;;  %v645_v50 = vpop.xlane.xlu0 %644  ;;  %v576_v56 = vmul.f32 0.6931472, %v2263_v31  ;;  %vm700_vm2 = vcmp.eq.s32.totalorder %v699_v20, 0 }
 0x174   : > { %2270 = vlog2.f32 %v551_v48  ;;  %v675_v35 = vsub.f32 %v595_v19, %v645_v50  ;;  %v596_v14 = vadd.f32 %v574_v36, %v3464_v22 }
 0x175   : > { %v597_v40 = vadd.f32 %v576_v56, %v3465_v23 }
 0x177   : > { %v554_v0 = vpop.xlane.xlu1 %553  ;;  %v651_v43 = vpop.xlane.xlu0 %650 }
 0x178   : > { %2272 = vlog2.f32 %v554_v0  ;;  %v677_v34 = vsub.f32 %v597_v40, %v651_v43 }
 0x179   : > { %v2265_v29 = vpop.eup %2264 }
 0x17a   : > { %v2267_v12 = vpop.eup %2266  ;;  %v580_v55 = vmul.f32 0.6931472, %v2265_v29 }
 0x17b   : > { %v642_v37 = vpop.xlane.xlu1 %641  ;;  %v578_v61 = vmul.f32 0.6931472, %v2267_v12  ;;  %v657_v62 = vpop.xlane.xlu0 %656 }
 0x17c   : > { %v674_v60 = vsub.f32 %v594_v53, %v642_v37  ;;  %v599_v3 = vadd.f32 %v580_v55, %v3466_v42 }
 0x17d   : > { %v2269_v5 = vpop.eup %2268  ;;  %v598_v26 = vadd.f32 %v578_v61, %v3467_v21 }
 0x17e   : > { %v689_v13 = vadd.f32 %v688_v57, %v674_v60  ;;  %v582_v18 = vmul.f32 0.6931472, %v2269_v5  ;;  %v679_v54 = vsub.f32 %v599_v3, %v657_v62 }
 0x17f   : > { %v648_v25 = vpop.xlane.xlu1 %647  ;;  %v663_v39 = vpop.xlane.xlu0 %662 }
 0x180   : > { %v676_v6 = vsub.f32 %v596_v14, %v648_v25  ;;  %v690_v4 = vadd.f32 %v689_v13, %v675_v35  ;;  %v600_v63 = vadd.f32 %v582_v18, %v3469_v16 }
 0x181   : > { %v2271_v41 = vpop.eup %2270 }
 0x182   : > { %v584_v2 = vmul.f32 0.6931472, %v2271_v41  ;;  %v691_v30 = vadd.f32 %v690_v4, %v676_v6 }
 0x183   : > { %v654_v44 = vpop.xlane.xlu1 %653 }
 0x184   : > { %v678_v9 = vsub.f32 %v598_v26, %v654_v44  ;;  %v692_v17 = vadd.f32 %v691_v30, %v677_v34  ;;  %v601_v59 = vadd.f32 %v584_v2, %v3468_v27 }
 0x185   : > { %v2273_v38 = vpop.eup %2272 }
 0x186   : > { %v586_v46 = vmul.f32 0.6931472, %v2273_v38  ;;  %v693_v51 = vadd.f32 %v692_v17, %v678_v9  ;;  %v681_v48 = vsub.f32 %v601_v59, %v663_v39 }
 0x187   : > { %v660_v11 = vpop.xlane.xlu1 %659 }
 0x188   : > { %v680_v8 = vsub.f32 %v600_v63, %v660_v11  ;;  %v694_v1 = vadd.f32 %v693_v51, %v679_v54  ;;  %v602_v49 = vadd.f32 %v586_v46, %v3470_v10 }
 0x18a   : > { %v695_v32 = vadd.f32 %v694_v1, %v680_v8 }
 0x18b   : > { %v666_v15 = vpop.xlane.xlu1 %665 }
 0x18c   : > { %v682_v24 = vsub.f32 %v602_v49, %v666_v15  ;;  %v696_v7 = vadd.f32 %v695_v32, %v681_v48 }
 0x18e   : > { %v697_v0 = vadd.f32 %v696_v7, %v682_v24 }
 0x190   : > { %v701_v31 = vsel %vm700_vm2, %v697_v0, 0.0 }
 0x191   : > { %702 = vst [vmem:[%s2572_s7] sm:$0xff] %v701_v31 }
 0x192 PF: > { %v3098_v33 = vld [vmem:[%s2565_s0 + $0x78] sm:$0xff]  ;;  %v3101_v58 = vld [vmem:[%s2565_s0 + $0x68] sm:$0xff]  ;;  %v3104_v52 = vld [vmem:[%s2565_s0 + $0x70] sm:$0xff]  ;;  %vm1360_vm3 = vcmask 80896   ;;  %s3471_s8 = sand.u32 1, %s2406_s22   ;;  %s2432_s16 = smov [#allocation3]  }
 0x193   : > { %v974_v50 = vmul.f32 %v3098_v33, %v3098_v33  ;;  %v972_v29 = vmul.f32 %v3101_v58, %v3101_v58  ;;  %v3111_v36 = vld [vmem:[%s2565_s0 + $0x60] sm:$0xff]  ;;  %v973_v28 = vmul.f32 %v3104_v52, %v3104_v52  ;;  %v3118_v12 = vld [vmem:[%s2565_s0 + $0x58] sm:$0xff]  ;;  %v3121_v56 = vld [vmem:[%s2565_s0 + $0x50] sm:$0xff]  ;;  %s1701_s13 = scalar_lea.sflag [#allocation4], %s3471_s8  ;;  %s2342_s17 = sshll.u32 %s2432_s16, 4  ;;  %s2343_s17 = int_to_ptr.vmem [resolvable:$false] %s2342_s17 }
 0x194   : > { %v971_v53 = vmul.f32 %v3111_v36, %v3111_v36  ;;  %v970_v37 = vmul.f32 %v3118_v12, %v3118_v12  ;;  %v969_v57 = vmul.f32 %v3121_v56, %v3121_v56  ;;  %v3128_v47 = vld [vmem:[%s2565_s0 + $0x48] sm:$0xff]  ;;  %v3131_v19 = vld [vmem:[%s2565_s0 + $0x40] sm:$0xff]  ;;  %v3138_v61 = vld [vmem:[%s2565_s0 + $0x38] sm:$0xff] }
 0x195   : > { %1005 = vadd.xlane.f32.xlu0 %v974_v50  ;;  %1001 = vadd.xlane.f32.xlu1 %v972_v29  ;;  %v968_v60 = vmul.f32 %v3128_v47, %v3128_v47  ;;  %v967_v55 = vmul.f32 %v3131_v19, %v3131_v19  ;;  %v3141_v35 = vld [vmem:[%s2565_s0 + $0x30] sm:$0xff]  ;;  %v966_v43 = vmul.f32 %v3138_v61, %v3138_v61  ;;  %v3148_v22 = vld [vmem:[%s2565_s0 + $0x28] sm:$0xff]  ;;  %v3151_v14 = vld [vmem:[%s2565_s0 + $0x20] sm:$0xff] }
 0x196   : > { %v965_v13 = vmul.f32 %v3141_v35, %v3141_v35  ;;  %v964_v5 = vmul.f32 %v3148_v22, %v3148_v22  ;;  %v963_v23 = vmul.f32 %v3151_v14, %v3151_v14  ;;  %v3158_v40 = vld [vmem:[%s2565_s0 + $0x18] sm:$0xff]  ;;  %v3161_v25 = vld [vmem:[%s2565_s0 + $0x10] sm:$0xff]  ;;  %v3168_v41 = vld [vmem:[%s2565_s0 + $0x8] sm:$0xff] }
 0x197   : > { %v962_v6 = vmul.f32 %v3158_v40, %v3158_v40  ;;  %v961_v4 = vmul.f32 %v3161_v25, %v3161_v25  ;;  %v3171_v34 = vld [vmem:[%s2565_s0] sm:$0xff]  ;;  %v960_v42 = vmul.f32 %v3168_v41, %v3168_v41  ;;  %v1359_v18 = vld [vmem:[%s2570_s1 + $0x78] sm:$0xff]  ;;  %v1358_v2 = vld [vmem:[%s2570_s1 + $0x70] sm:$0xff]  ;;  %s1896_s0 = sshll.u32 %s2418_s25, 7  ;;  %s2344_s25 = scalar_lea.vmem %s2343_s17, 256 }
 0x198   : > { %v959_v3 = vmul.f32 %v3171_v34, %v3171_v34  ;;  %2019 = vmatprep.subr.msk.mxu1 %vm1360_vm3, %v1359_v18  ;;  %v1357_v62 = vld [vmem:[%s2570_s1 + $0x68] sm:$0xff]  ;;  %v1356_v30 = vld [vmem:[%s2570_s1 + $0x60] sm:$0xff]  ;;  %v1355_v21 = vld [vmem:[%s2570_s1 + $0x58] sm:$0xff] }
 0x199   : > { %1003 = vadd.xlane.f32.xlu0 %v973_v28  ;;  %999 = vadd.xlane.f32.xlu1 %v971_v53  ;;  %v1354_v26 = vld [vmem:[%s2570_s1 + $0x50] sm:$0xff]  ;;  %v1353_v44 = vld [vmem:[%s2570_s1 + $0x48] sm:$0xff]  ;;  %v1352_v9 = vld [vmem:[%s2570_s1 + $0x40] sm:$0xff] }
 0x19a   : > { %2020 = vmatpush3.xpose.msk.msra.mxu1 %vm1360_vm3, %v1359_v18  ;;  %v1351_v17 = vld [vmem:[%s2570_s1 + $0x38] sm:$0xff]  ;;  %v1350_v38 = vld [vmem:[%s2570_s1 + $0x30] sm:$0xff]  ;;  %v1349_v54 = vld [vmem:[%s2570_s1 + $0x28] sm:$0xff] }
 0x19b   : > { %2021 = vmatprep.subr.msk.mxu1 %vm1360_vm3, %v1358_v2  ;;  %v1348_v45 = vld [vmem:[%s2570_s1 + $0x20] sm:$0xff]  ;;  %v1347_v46 = vld [vmem:[%s2570_s1 + $0x18] sm:$0xff]  ;;  %v1346_v51 = vld [vmem:[%s2570_s1 + $0x10] sm:$0xff] }
 0x19c   : > { %v1345_v27 = vld [vmem:[%s2570_s1 + $0x8] sm:$0xff]  ;;  %v1344_v59 = vld [vmem:[%s2570_s1] sm:$0xff]  ;;  %v1167_v39 = vld [vmem:[#allocation2 + $0x30] sm:$0xff]  ;;  %s1714_s1 = sshll.u32 %s2572_s7, 4  ;;  %s1715_s1 = int_to_ptr.vmem [resolvable:$true] %s1714_s1 }
 0x19d   : > { %997 = vadd.xlane.f32.xlu0 %v970_v37  ;;  %995 = vadd.xlane.f32.xlu1 %v969_v57  ;;  %v1328_v16 = vld [vmem:[%s2555_s27] sm:$0xff]  ;;  %v1329_v63 = vld [vmem:[%s2555_s27 + $0x8] sm:$0xff]  ;;  %v1330_v11 = vld [vmem:[%s2555_s27 + $0x10] sm:$0xff]  ;;  %s2338_s14 = scalar_lea.vmem %s1715_s1, 128  ;;  %p2345_p5 = scmp.lt.s32.totalorder %s1715_s1, %s2343_s17 }
 0x19e   : > { %2022 = vmatpush3.xpose.msk.msra.mxu1 %vm1360_vm3, %v1358_v2  ;;  %2051 = vmatprep.mubr.msk.f32.mxu1 %vm1360_vm3, %v1328_v16  ;;  %v1331_v8 = vld [vmem:[%s2555_s27 + $0x18] sm:$0xff]  ;;  %v1332_v1 = vld [vmem:[%s2555_s27 + $0x20] sm:$0xff]  ;;  %v1333_v20 = vld [vmem:[%s2555_s27 + $0x28] sm:$0xff]  ;;  %p2339_p1 = scmp.ne.s32.totalorder %s1715_s1, %s2338_s14  ;;  %p2346_p6 = scmp.lt.s32.totalorder %s2344_s25, %s2338_s14 }
 0x19f   : > { %2023 = vmatprep.subr.msk.mxu1 %vm1360_vm3, %v1357_v62  ;;  %1995 = vmatprep.mubr.f32.mxu0 %v1167_v39  ;;  %v1334_v48 = vld [vmem:[%s2555_s27 + $0x30] sm:$0xff]  ;;  %v1335_v32 = vld [vmem:[%s2555_s27 + $0x38] sm:$0xff]  ;;  %v1336_v10 = vld [vmem:[%s2555_s27 + $0x40] sm:$0xff] }
 0x1a0   : > { %v1337_v49 = vld [vmem:[%s2555_s27 + $0x48] sm:$0xff]  ;;  %v1338_v15 = vld [vmem:[%s2555_s27 + $0x50] sm:$0xff]  ;;  %v1339_v24 = vld [vmem:[%s2555_s27 + $0x58] sm:$0xff]  ;;  %p2340_p2 = pnand %p2339_p1, %p2517_p3  ;;  %p2347_p7 = por %p2346_p6, %p2345_p5 }
 0x1a1   : > { %993 = vadd.xlane.f32.xlu0 %v968_v60  ;;  %991 = vadd.xlane.f32.xlu1 %v967_v55  ;;  %v1340_v7 = vld [vmem:[%s2555_s27 + $0x60] sm:$0xff]  ;;  %v1341_v0 = vld [vmem:[%s2555_s27 + $0x68] sm:$0xff]  ;;  %v1342_v31 = vld [vmem:[%s2555_s27 + $0x70] sm:$0xff] }
 0x1a2   : > { %2024 = vmatpush3.xpose.msk.msra.mxu1 %vm1360_vm3, %v1357_v62  ;;  %v1343_v50 = vld [vmem:[%s2555_s27 + $0x78] sm:$0xff]  ;;  %s1712_s27 = scalar_lea.hbm %s3428_s6, %s1896_s0  ;;  %p2341_p4 = pneg %p2340_p2 }
 0x1a3   : > { %2025 = vmatprep.subr.msk.mxu1 %vm1360_vm3, %v1356_v30 }
 0x1a4   : > { %p2348_p8 = pnand %p2347_p7, %p2341_p4 }
 0x1a5   : > { %989 = vadd.xlane.f32.xlu0 %v966_v43  ;;  %987 = vadd.xlane.f32.xlu1 %v965_v13 }
 0x1a6   : > { %2026 = vmatpush3.xpose.msk.msra.mxu1 %vm1360_vm3, %v1356_v30 }
 0x1a7   : > { %2027 = vmatprep.subr.msk.mxu1 %vm1360_vm3, %v1355_v21 }
 0x1a9   : > { %985 = vadd.xlane.f32.xlu0 %v964_v5  ;;  %983 = vadd.xlane.f32.xlu1 %v963_v23 }
 0x1aa   : > { %2028 = vmatpush3.xpose.msk.msra.mxu1 %vm1360_vm3, %v1355_v21 }
 0x1ab   : > { %2029 = vmatprep.subr.msk.mxu1 %vm1360_vm3, %v1354_v26 }
 0x1ad   : > { %981 = vadd.xlane.f32.xlu0 %v962_v6  ;;  %979 = vadd.xlane.f32.xlu1 %v961_v4 }
 0x1ae   : > { %2030 = vmatpush3.xpose.msk.msra.mxu1 %vm1360_vm3, %v1354_v26 }
 0x1af   : > { %2031 = vmatprep.subr.msk.mxu1 %vm1360_vm3, %v1353_v44 }
 0x1b1   : > { %977 = vadd.xlane.f32.xlu0 %v960_v42  ;;  %975 = vadd.xlane.f32.xlu1 %v959_v3 }
 0x1b2   : > { %2032 = vmatpush3.xpose.msk.msra.mxu1 %vm1360_vm3, %v1353_v44 }
 0x1b3   : > { %2033 = vmatprep.subr.msk.mxu1 %vm1360_vm3, %v1352_v9 }
 0x1b6   : > { %2034 = vmatpush3.xpose.msk.msra.mxu1 %vm1360_vm3, %v1352_v9 }
 0x1b7   : > { %2035 = vmatprep.subr.msk.mxu1 %vm1360_vm3, %v1351_v17 }
 0x1ba   : > { %2036 = vmatpush3.xpose.msk.msra.mxu1 %vm1360_vm3, %v1351_v17 }
 0x1bb   : > { %2037 = vmatprep.subr.msk.mxu1 %vm1360_vm3, %v1350_v38 }
 0x1be   : > { %2038 = vmatpush3.xpose.msk.msra.mxu1 %vm1360_vm3, %v1350_v38 }
 0x1bf   : > { %2039 = vmatprep.subr.msk.mxu1 %vm1360_vm3, %v1349_v54 }
 0x1c2   : > { %2040 = vmatpush3.xpose.msk.msra.mxu1 %vm1360_vm3, %v1349_v54 }
 0x1c3   : > { %2041 = vmatprep.subr.msk.mxu1 %vm1360_vm3, %v1348_v45 }
 0x1c6   : > { %2042 = vmatpush3.xpose.msk.msra.mxu1 %vm1360_vm3, %v1348_v45 }
 0x1c7   : > { %2043 = vmatprep.subr.msk.mxu1 %vm1360_vm3, %v1347_v46 }
 0x1ca   : > { %2044 = vmatpush3.xpose.msk.msra.mxu1 %vm1360_vm3, %v1347_v46 }
 0x1cb   : > { %2045 = vmatprep.subr.msk.mxu1 %vm1360_vm3, %v1346_v51 }
 0x1ce   : > { %2046 = vmatpush3.xpose.msk.msra.mxu1 %vm1360_vm3, %v1346_v51 }
 0x1cf   : > { %2047 = vmatprep.subr.msk.mxu1 %vm1360_vm3, %v1345_v27 }
 0x1d2   : > { %2048 = vmatpush3.xpose.msk.msra.mxu1 %vm1360_vm3, %v1345_v27 }
 0x1d3   : > { %2049 = vmatprep.subr.msk.mxu1 %vm1360_vm3, %v1344_v59 }
 0x1d6   : > { %2050 = vmatpush3.xpose.msk.msra.mxu1 %vm1360_vm3, %v1344_v59 }
 0x1d9   : > { %2052 = vmatmul.mubr.msk.f32.vlgmr.msra.gmra.mxu1 %vm1360_vm3, %v1329_v63 }
 0x1da   : > { %2054 = vmatprep.mubr.msk.f32.mxu1 %vm1360_vm3, %v1330_v11 }
 0x1dd   : > { %2055 = vmatmul.mubr.msk.f32.gmra.mxu1 %vm1360_vm3, %v1331_v8 }
 0x1de   : > { %2057 = vmatprep.mubr.msk.f32.mxu1 %vm1360_vm3, %v1332_v1 }
 0x1e1   : > { %2058 = vmatmul.mubr.msk.f32.gmra.mxu1 %vm1360_vm3, %v1333_v20 }
 0x1e2   : > { %2060 = vmatprep.mubr.msk.f32.mxu1 %vm1360_vm3, %v1334_v48 }
 0x1e5   : > { %2061 = vmatmul.mubr.msk.f32.gmra.mxu1 %vm1360_vm3, %v1335_v32 }
 0x1e6   : > { %2063 = vmatprep.mubr.msk.f32.mxu1 %vm1360_vm3, %v1336_v10 }
 0x1e9   : > { %2064 = vmatmul.mubr.msk.f32.gmra.mxu1 %vm1360_vm3, %v1337_v49 }
 0x1ea   : > { %2066 = vmatprep.mubr.msk.f32.mxu1 %vm1360_vm3, %v1338_v15 }
 0x1ed   : > { %2067 = vmatmul.mubr.msk.f32.gmra.mxu1 %vm1360_vm3, %v1339_v24 }
 0x1ee   : > { %2069 = vmatprep.mubr.msk.f32.mxu1 %vm1360_vm3, %v1340_v7 }
 0x1f1   : > { %2070 = vmatmul.mubr.msk.f32.gmra.mxu1 %vm1360_vm3, %v1341_v0 }
 0x1f2   : > { %2072 = vmatprep.mubr.msk.f32.mxu1 %vm1360_vm3, %v1342_v31 }
 0x1f5   : > { %2073 = vmatmul.mubr.msk.f32.gmra.mxu1 %vm1360_vm3, %v1343_v50 }
 0x21e   : > { %v1006_v29 = vpop.xlane.xlu0 %1005  ;;  %v1002_v28 = vpop.xlane.xlu1 %1001 }
 0x21f   : > { %2274 = vrsqrt.f32 %v1006_v29  ;;  %vm1114_vm4 = vcmp.eq.f32.partialorder %v1006_v29, inf  ;;  %v1117_v6 = vand.u32 2147483648, %v1006_v29  ;;  %vm1116_vm5 = vcmp.eq.f32.partialorder %v1006_v29, 0.0 }
 0x220   : > { %2276 = vrsqrt.f32 %v1002_v28  ;;  %vm1100_vm6 = vcmp.eq.f32.partialorder %v1002_v28, inf  ;;  %v1103_v18 = vand.u32 2147483648, %v1002_v28  ;;  %vm1102_vm7 = vcmp.eq.f32.partialorder %v1002_v28, 0.0 }
 0x222   : > { %v1004_v53 = vpop.xlane.xlu0 %1003  ;;  %v1000_v37 = vpop.xlane.xlu1 %999 }
 0x223   : > { %2278 = vrsqrt.f32 %v1004_v53  ;;  %vm1107_vm8 = vcmp.eq.f32.partialorder %v1004_v53, inf  ;;  %vm1109_vm9 = vcmp.eq.f32.partialorder %v1004_v53, 0.0  ;;  %v1110_v38 = vand.u32 2147483648, %v1004_v53 }
 0x224   : > { %2280 = vrsqrt.f32 %v1000_v37  ;;  %vm1093_vm10 = vcmp.eq.f32.partialorder %v1000_v37, inf  ;;  %v1096_v51 = vand.u32 2147483648, %v1000_v37  ;;  %vm1095_vm11 = vcmp.eq.f32.partialorder %v1000_v37, 0.0 }
 0x226   : > { %v998_v57 = vpop.xlane.xlu0 %997  ;;  %v3257_v60 = vpop.xlane.xlu1 %995 }
 0x227   : > { %2282 = vrsqrt.f32 %v998_v57  ;;  %vm1086_vm12 = vcmp.eq.f32.partialorder %v998_v57, inf  ;;  %v1089_v1 = vand.u32 2147483648, %v998_v57  ;;  %vm1088_vm0 = vcmp.eq.f32.partialorder %v998_v57, 0.0 }
 0x228   : > { %2284 = vrsqrt.f32 %v3257_v60  ;;  %vm1079_vm13 = vcmp.eq.f32.partialorder %v3257_v60, inf  ;;  %v1082_v31 = vand.u32 2147483648, %v3257_v60  ;;  %vm1081_vm14 = vcmp.eq.f32.partialorder %v3257_v60, 0.0 }
 0x22a   : > { %v3260_v55 = vpop.xlane.xlu0 %993  ;;  %v3262_v43 = vpop.xlane.xlu1 %991 }
 0x22b   : > { %2286 = vrsqrt.f32 %v3260_v55  ;;  %vm1072_vm15 = vcmp.eq.f32.partialorder %v3260_v55, inf  ;;  %vm1065_vm1 = vcmp.eq.f32.partialorder %v3262_v43, inf  ;;  %vm1074_vm2 = vcmp.eq.f32.partialorder %v3260_v55, 0.0 }
 0x22c   : > { %v2275_v13 = vpop.eup %2274  ;;  %2288 = vrsqrt.f32 %v3262_v43  ;;  %vm1067_vm3 = vcmp.eq.f32.partialorder %v3262_v43, 0.0 }
 0x22d   : > { %v2277_v5 = vpop.eup %2276  ;;  %v1113_v23 = vmul.f32 %v2275_v13, %v1006_v29  ;;  %v1075_v13 = vand.u32 2147483648, %v3260_v55 }
 0x22e   : > { %v1099_v4 = vmul.f32 %v2277_v5, %v1002_v28  ;;  %v3266_v42 = vpop.xlane.xlu0 %989  ;;  %v3269_v45 = vpop.xlane.xlu1 %987 }
 0x22f   : > { %v1115_v3 = vsel %vm1114_vm4, %v1006_v29, %v1113_v23  ;;  %2290 = vrsqrt.f32 %v3266_v42  ;;  %vm1058_vm4 = vcmp.eq.f32.partialorder %v3266_v42, inf }
 0x230   : > { %v2279_v2 = vpop.eup %2278  ;;  %v1118_v62 = vsel %vm1116_vm5, %v1117_v6, %v1115_v3  ;;  %v1101_v30 = vsel %vm1100_vm6, %v1002_v28, %v1099_v4  ;;  %v1068_v4 = vand.u32 2147483648, %v3262_v43  ;;  %vm1060_vm5 = vcmp.eq.f32.partialorder %v3266_v42, 0.0 }
 0x231   : > { %v2281_v21 = vpop.eup %2280  ;;  %v1134_v26 = vadd.f32 1e-09, %v1118_v62  ;;  %v1104_v44 = vsel %vm1102_vm7, %v1103_v18, %v1101_v30  ;;  %v1106_v9 = vmul.f32 %v2279_v2, %v1004_v53  ;;  %vm1051_vm6 = vcmp.eq.f32.partialorder %v3269_v45, inf }
 0x232   : > { %v1132_v17 = vadd.f32 1e-09, %v1104_v44  ;;  %v1092_v54 = vmul.f32 %v2281_v21, %v1000_v37  ;;  %v3273_v48 = vpop.xlane.xlu0 %985  ;;  %v3280_v50 = vpop.xlane.xlu1 %983  ;;  %vm1053_vm7 = vcmp.eq.f32.partialorder %v3269_v45, 0.0 }
 0x233   : > { %2292 = vrcp.f32 %v1134_v26  ;;  %v1108_v46 = vsel %vm1107_vm8, %v1004_v53, %v1106_v9  ;;  %vm1044_vm8 = vcmp.eq.f32.partialorder %v3273_v48, inf }
 0x234   : > { %v2283_v27 = vpop.eup %2282  ;;  %v1111_v59 = vsel %vm1109_vm9, %v1110_v38, %v1108_v46  ;;  %v1094_v16 = vsel %vm1093_vm10, %v1000_v37, %v1092_v54  ;;  %2294 = vrsqrt.f32 %v3269_v45  ;;  %vm1046_vm9 = vcmp.eq.f32.partialorder %v3273_v48, 0.0 }
 0x235   : > { %v2285_v63 = vpop.eup %2284  ;;  %v1133_v39 = vadd.f32 1e-09, %v1111_v59  ;;  %v1097_v11 = vsel %vm1095_vm11, %v1096_v51, %v1094_v16  ;;  %v1085_v8 = vmul.f32 %v2283_v27, %v998_v57  ;;  %2296 = vrcp.f32 %v1132_v17 }
 0x236   : > { %v1078_v20 = vmul.f32 %v2285_v63, %v3257_v60  ;;  %v1131_v32 = vadd.f32 1e-09, %v1097_v11  ;;  %v3289_v5 = vpop.xlane.xlu0 %981  ;;  %v3299_v30 = vpop.xlane.xlu1 %979  ;;  %vm1037_vm10 = vcmp.eq.f32.partialorder %v3280_v50, inf  ;;  %vm1039_vm11 = vcmp.eq.f32.partialorder %v3280_v50, 0.0 }
 0x237   : > { %2298 = vrcp.f32 %v1133_v39  ;;  %v1087_v10 = vsel %vm1086_vm12, %v998_v57, %v1085_v8  ;;  %vm1030_vm12 = vcmp.eq.f32.partialorder %v3289_v5, inf }
 0x238   : > { %v2287_v49 = vpop.eup %2286  ;;  %v1090_v15 = vsel %vm1088_vm0, %v1089_v1, %v1087_v10  ;;  %v1080_v24 = vsel %vm1079_vm13, %v3257_v60, %v1078_v20  ;;  %2300 = vrsqrt.f32 %v3273_v48  ;;  %v1047_v20 = vand.u32 2147483648, %v3273_v48 }
 0x239   : > { %v1071_v7 = vmul.f32 %v2287_v49, %v3260_v55  ;;  %v2289_v0 = vpop.eup %2288  ;;  %2302 = vrcp.f32 %v1131_v32  ;;  %v1130_v29 = vadd.f32 1e-09, %v1090_v15  ;;  %v1083_v28 = vsel %vm1081_vm14, %v1082_v31, %v1080_v24 }
 0x23a   : > { %v1064_v37 = vmul.f32 %v2289_v0, %v3262_v43  ;;  %2304 = vrsqrt.f32 %v3280_v50  ;;  %v1129_v23 = vadd.f32 1e-09, %v1083_v28  ;;  %v3308_v54 = vpop.xlane.xlu0 %977  ;;  %v3317_v39 = vpop.xlane.xlu1 %975  ;;  %vm1032_vm0 = vcmp.eq.f32.partialorder %v3289_v5, 0.0 }
 0x23b   : > { %v1073_v53 = vsel %vm1072_vm15, %v3260_v55, %v1071_v7  ;;  %2306 = vrcp.f32 %v1130_v29  ;;  %v1040_v7 = vand.u32 2147483648, %v3280_v50  ;;  %vm1023_vm13 = vcmp.eq.f32.partialorder %v3299_v30, inf }
 0x23c   : > { %v2291_v57 = vpop.eup %2290  ;;  %v1076_v6 = vsel %vm1074_vm2, %v1075_v13, %v1073_v53  ;;  %v1066_v3 = vsel %vm1065_vm1, %v3262_v43, %v1064_v37  ;;  %2308 = vrsqrt.f32 %v3289_v5  ;;  %v1061_v43 = vand.u32 2147483648, %v3266_v42 }
 0x23d   : > { %v1057_v18 = vmul.f32 %v2291_v57, %v3266_v42  ;;  %2310 = vrcp.f32 %v1129_v23  ;;  %v1128_v21 = vadd.f32 1e-09, %v1076_v6  ;;  %v1069_v44 = vsel %vm1067_vm3, %v1068_v4, %v1066_v3 }
 0x23e   : > { %2312 = vrsqrt.f32 %v3299_v30  ;;  %v1127_v46 = vadd.f32 1e-09, %v1069_v44  ;;  %v1033_v37 = vand.u32 2147483648, %v3289_v5  ;;  %v1026_v4 = vand.u32 2147483648, %v3299_v30 }
 0x23f   : > { %v1059_v9 = vsel %vm1058_vm4, %v3266_v42, %v1057_v18  ;;  %2314 = vrcp.f32 %v1128_v21  ;;  %v1054_v42 = vand.u32 2147483648, %v3269_v45  ;;  %vm1025_vm14 = vcmp.eq.f32.partialorder %v3299_v30, 0.0 }
 0x240   : > { %v2293_v60 = vpop.eup %2292  ;;  %v1062_v59 = vsel %vm1060_vm5, %v1061_v43, %v1059_v9  ;;  %2316 = vrsqrt.f32 %v3308_v54  ;;  %vm1016_vm15 = vcmp.eq.f32.partialorder %v3308_v54, inf  ;;  %v1019_v21 = vand.u32 2147483648, %v3308_v54 }
 0x241   : > { %v1166_v2 = vmul.f32 %v2293_v60, %v3098_v33  ;;  %v2295_v62 = vpop.eup %2294  ;;  %2318 = vrcp.f32 %v1127_v46  ;;  %vm1018_vm1 = vcmp.eq.f32.partialorder %v3308_v54, 0.0  ;;  %vm1009_vm2 = vcmp.eq.f32.partialorder %v3317_v39, inf }
 0x242   : > { %v2297_v55 = vpop.eup %2296  ;;  %v1050_v33 = vmul.f32 %v2295_v62, %v3269_v45  ;;  %2320 = vrsqrt.f32 %v3317_v39  ;;  %vm1011_vm3 = vcmp.eq.f32.partialorder %v3317_v39, 0.0 }
 0x243   : > { %1963 = vmatprep.subr.mxu0 %v1166_v2  ;;  %v1162_v51 = vmul.f32 %v2297_v55, %v3101_v58  ;;  %v1126_v58 = vadd.f32 1e-09, %v1062_v59 }
 0x244   : > { %v2299_v26 = vpop.eup %2298  ;;  %1964 = vmatpush3.xpose.msra.mxu0 %v1166_v2  ;;  %v1052_v16 = vsel %vm1051_vm6, %v3269_v45, %v1050_v33  ;;  %v1012_v33 = vand.u32 2147483648, %v3317_v39 }
 0x245   : > { %v1164_v17 = vmul.f32 %v2299_v26, %v3104_v52  ;;  %v2301_v38 = vpop.eup %2300  ;;  %v1055_v1 = vsel %vm1053_vm7, %v1054_v42, %v1052_v16  ;;  %2322 = vrcp.f32 %v1126_v58 }
 0x246   : > { %v2303_v27 = vpop.eup %2302  ;;  %v1043_v52 = vmul.f32 %v2301_v38, %v3273_v48  ;;  %v1125_v49 = vadd.f32 1e-09, %v1055_v1  ;;  %v1171_v1 = vld [vmem:[#allocation2 + $0x50] sm:$0xff] }
 0x247   : > { %1965 = vmatprep.subr.mxu0 %v1164_v17  ;;  %v2305_v63 = vpop.eup %2304  ;;  %v1160_v11 = vmul.f32 %v2303_v27, %v3111_v36 }
 0x248   : > { %1966 = vmatpush3.xpose.msra.mxu0 %v1164_v17  ;;  %v2307_v8 = vpop.eup %2306  ;;  %v1045_v45 = vsel %vm1044_vm8, %v3273_v48, %v1043_v52  ;;  %v1036_v32 = vmul.f32 %v2305_v63, %v3280_v50  ;;  %2324 = vrcp.f32 %v1125_v49  ;;  %v1179_v49 = vld [vmem:[#allocation2 + $0x60] sm:$0xff] }
 0x249   : > { %1967 = vmatprep.subr.mxu0 %v1162_v51  ;;  %v2309_v10 = vpop.eup %2308  ;;  %v1158_v36 = vmul.f32 %v2307_v8, %v3118_v12  ;;  %v1048_v24 = vsel %vm1046_vm9, %v1047_v20, %v1045_v45  ;;  %v1170_v8 = vld [vmem:[#allocation2 + $0x18] sm:$0xff]  ;;  %v1173_v20 = vld [vmem:[#allocation2 + $0x8] sm:$0xff]  ;;  %v1175_v45 = vld [vmem:[#allocation2 + $0x40] sm:$0xff] }
 0x24a   : > { %v2311_v15 = vpop.eup %2310  ;;  %v1038_v0 = vsel %vm1037_vm10, %v3280_v50, %v1036_v32  ;;  %v1029_v48 = vmul.f32 %v2309_v10, %v3289_v5  ;;  %v1124_v29 = vadd.f32 1e-09, %v1048_v24  ;;  %v1177_v32 = vld [vmem:[#allocation2 + $0x10] sm:$0xff]  ;;  %v1178_v10 = vld [vmem:[#allocation2 + $0x38] sm:$0xff]  ;;  %v1182_v24 = vld [vmem:[#allocation2 + $0x28] sm:$0xff] }
 0x24b   : > { %v2313_v31 = vpop.eup %2312  ;;  %v1156_v28 = vmul.f32 %v2311_v15, %v3121_v56  ;;  %v1041_v53 = vsel %vm1039_vm11, %v1040_v7, %v1038_v0  ;;  %v1181_v15 = vld [vmem:[#allocation2 + $0x78] sm:$0xff] }
 0x24c   : > { %1968 = vmatpush3.xpose.msra.mxu0 %v1162_v51  ;;  %v2315_v12 = vpop.eup %2314  ;;  %v1031_v57 = vsel %vm1030_vm12, %v3289_v5, %v1029_v48  ;;  %v1022_v50 = vmul.f32 %v2313_v31, %v3299_v30  ;;  %2326 = vrcp.f32 %v1124_v29  ;;  %v1123_v23 = vadd.f32 1e-09, %v1041_v53 }
 0x24d   : > { %1969 = vmatprep.subr.mxu0 %v1160_v11  ;;  %v2317_v13 = vpop.eup %2316  ;;  %v1154_v60 = vmul.f32 %v2315_v12, %v3128_v47  ;;  %v1034_v6 = vsel %vm1032_vm0, %v1033_v37, %v1031_v57 }
 0x24e   : > { %v2319_v56 = vpop.eup %2318  ;;  %v1024_v3 = vsel %vm1023_vm13, %v3299_v30, %v1022_v50  ;;  %v1015_v5 = vmul.f32 %v2317_v13, %v3308_v54  ;;  %2328 = vrcp.f32 %v1123_v23  ;;  %v1122_v2 = vadd.f32 1e-09, %v1034_v6 }
 0x24f   : > { %v2321_v18 = vpop.eup %2320  ;;  %v1152_v62 = vmul.f32 %v2319_v56, %v3131_v19  ;;  %v1027_v55 = vsel %vm1025_vm14, %v1026_v4, %v1024_v3 }
 0x250   : > { %1970 = vmatpush3.xpose.msra.mxu0 %v1160_v11  ;;  %v1017_v26 = vsel %vm1016_vm15, %v3308_v54, %v1015_v5  ;;  %v1008_v30 = vmul.f32 %v2321_v18, %v3317_v39  ;;  %2330 = vrcp.f32 %v1122_v2  ;;  %v1121_v44 = vadd.f32 1e-09, %v1027_v55  ;;  %v1168_v11 = vld [vmem:[#allocation2] sm:$0xff] }
 0x251   : > { %1971 = vmatprep.subr.mxu0 %v1158_v36  ;;  %v1020_v19 = vsel %vm1018_vm1, %v1019_v21, %v1017_v26 }
 0x252   : > { %v2323_v47 = vpop.eup %2322  ;;  %v1010_v17 = vsel %vm1009_vm2, %v3317_v39, %v1008_v30  ;;  %2332 = vrcp.f32 %v1121_v44  ;;  %v1120_v38 = vadd.f32 1e-09, %v1020_v19 }
 0x253   : > { %v1150_v43 = vmul.f32 %v2323_v47, %v3138_v61  ;;  %v1013_v51 = vsel %vm1011_vm3, %v1012_v33, %v1010_v17 }
 0x254   : > { %1972 = vmatpush3.xpose.msra.mxu0 %v1158_v36  ;;  %2334 = vrcp.f32 %v1120_v38  ;;  %v1119_v61 = vadd.f32 1e-09, %v1013_v51  ;;  %v1180_v36 = vld [vmem:[#allocation2 + $0x70] sm:$0xff] }
 0x255   : > { %1973 = vmatprep.subr.mxu0 %v1156_v28  ;;  %v2325_v9 = vpop.eup %2324 }
 0x256   : > { %v1148_v54 = vmul.f32 %v2325_v9, %v3141_v35  ;;  %2336 = vrcp.f32 %v1119_v61 }
 0x258   : > { %1974 = vmatpush3.xpose.msra.mxu0 %v1156_v28 }
 0x259   : > { %1975 = vmatprep.subr.mxu0 %v1154_v60  ;;  %v2327_v46 = vpop.eup %2326 }
 0x25a   : > { %v1146_v27 = vmul.f32 %v2327_v46, %v3148_v22 }
 0x25b   : > { %v2329_v59 = vpop.eup %2328 }
 0x25c   : > { %1976 = vmatpush3.xpose.msra.mxu0 %v1154_v60  ;;  %v1144_v42 = vmul.f32 %v2329_v59, %v3151_v14 }
 0x25d   : > { %1977 = vmatprep.subr.mxu0 %v1152_v62  ;;  %v2331_v16 = vpop.eup %2330 }
 0x25e   : > { %v1142_v52 = vmul.f32 %v2331_v16, %v3158_v40  ;;  %v1169_v40 = vld [vmem:[#allocation2 + $0x58] sm:$0xff] }
 0x25f   : > { %v2333_v35 = vpop.eup %2332 }
 0x260   : > { %1978 = vmatpush3.xpose.msra.mxu0 %v1152_v62  ;;  %v1140_v63 = vmul.f32 %v2333_v35, %v3161_v25  ;;  %v1172_v25 = vld [vmem:[#allocation2 + $0x68] sm:$0xff] }
 0x261   : > { %1979 = vmatprep.subr.mxu0 %v1150_v43  ;;  %v2335_v39 = vpop.eup %2334 }
 0x262   : > { %v1138_v22 = vmul.f32 %v2335_v39, %v3168_v41  ;;  %v1174_v41 = vld [vmem:[#allocation2 + $0x48] sm:$0xff] }
 0x263   : > { %v2337_v58 = vpop.eup %2336 }
 0x264   : > { %1980 = vmatpush3.xpose.msra.mxu0 %v1150_v43  ;;  %v1136_v14 = vmul.f32 %v2337_v58, %v3171_v34  ;;  %v1176_v34 = vld [vmem:[#allocation2 + $0x20] sm:$0xff] }
 0x265   : > { %1981 = vmatprep.subr.mxu0 %v1148_v54 }
 0x268   : > { %1982 = vmatpush3.xpose.msra.mxu0 %v1148_v54 }
 0x269   : > { %1983 = vmatprep.subr.mxu0 %v1146_v27 }
 0x26c   : > { %1984 = vmatpush3.xpose.msra.mxu0 %v1146_v27 }
 0x26d   : > { %1985 = vmatprep.subr.mxu0 %v1144_v42 }
 0x270   : > { %1986 = vmatpush3.xpose.msra.mxu0 %v1144_v42 }
 0x271   : > { %1987 = vmatprep.subr.mxu0 %v1142_v52 }
 0x274   : > { %1988 = vmatpush3.xpose.msra.mxu0 %v1142_v52 }
 0x275   : > { %1989 = vmatprep.subr.mxu0 %v1140_v63 }
 0x278   : > { %1990 = vmatpush3.xpose.msra.mxu0 %v1140_v63 }
 0x279   : > { %1991 = vmatprep.subr.mxu0 %v1138_v22 }
 0x27c   : > { %1992 = vmatpush3.xpose.msra.mxu0 %v1138_v22 }
 0x27d   : > { %1993 = vmatprep.subr.mxu0 %v1136_v14 }
 0x280   : > { %1994 = vmatpush3.xpose.msra.mxu0 %v1136_v14 }
 0x283   : > { %1996 = vmatmul.mubr.f32.vlgmr.msra.gmra.mxu0 %v1168_v11 }
 0x284   : > { %1998 = vmatprep.mubr.f32.mxu0 %v1169_v40 }
 0x287   : > { %1999 = vmatmul.mubr.f32.gmra.mxu0 %v1170_v8 }
 0x288   : > { %2001 = vmatprep.mubr.f32.mxu0 %v1171_v1 }
 0x28b   : > { %2002 = vmatmul.mubr.f32.gmra.mxu0 %v1172_v25 }
 0x28c   : > { %2004 = vmatprep.mubr.f32.mxu0 %v1173_v20 }
 0x28f   : > { %2005 = vmatmul.mubr.f32.gmra.mxu0 %v1174_v41 }
 0x290   : > { %2007 = vmatprep.mubr.f32.mxu0 %v1175_v45 }
 0x293   : > { %2008 = vmatmul.mubr.f32.gmra.mxu0 %v1176_v34 }
 0x294   : > { %2010 = vmatprep.mubr.f32.mxu0 %v1177_v32 }
 0x297   : > { %2011 = vmatmul.mubr.f32.gmra.mxu0 %v1178_v10 }
 0x298   : > { %2013 = vmatprep.mubr.f32.mxu0 %v1179_v49 }
 0x299   : > { %v2053_v7 = vpop.f32.mrf.mxu1 }
 0x29a   : > { %v1619_v56 = vmul.f32 %v2053_v7, %v2053_v7 }
 0x29b   : > { %2014 = vmatmul.mubr.f32.gmra.mxu0 %v1180_v36  ;;  %v1523_v0 = vpop.f32.mrf.mxu1 }
 0x29c   : > { %2016 = vmatprep.mubr.f32.mxu0 %v1181_v15  ;;  %v1618_v57 = vmul.f32 %v1523_v0, %v1523_v0  ;;  %v1635_v26 = vmul.f32 %v2053_v7, %v1619_v56 }
 0x29d   : > { %v2056_v48 = vpop.f32.mrf.mxu1 }
 0x29e   : > { %v1634_v4 = vmul.f32 %v1618_v57, %v1523_v0  ;;  %v1621_v55 = vmul.f32 %v2056_v48, %v2056_v48 }
 0x29f   : > { %2017 = vmatmul.mubr.f32.gmra.mxu0 %v1182_v24  ;;  %v1533_v31 = vpop.f32.mrf.mxu1 }
 0x2a0   : > { %v1620_v2 = vmul.f32 %v1533_v31, %v1533_v31  ;;  %v1637_v51 = vmul.f32 %v2056_v48, %v1621_v55 }
 0x2a1   : > { %v2059_v29 = vpop.f32.mrf.mxu1 }
 0x2a2   : > { %v1636_v17 = vmul.f32 %v1620_v2, %v1533_v31  ;;  %v1623_v59 = vmul.f32 %v2059_v29, %v2059_v29 }
 0x2a3   : > { %v1543_v28 = vpop.f32.mrf.mxu1 }
 0x2a4   : > { %v1622_v9 = vmul.f32 %v1543_v28, %v1543_v28  ;;  %v1639_v25 = vmul.f32 %v2059_v29, %v1623_v59 }
 0x2a5   : > { %v2062_v12 = vpop.f32.mrf.mxu1 }
 0x2a6   : > { %v1638_v35 = vmul.f32 %v1622_v9, %v1543_v28  ;;  %v1625_v8 = vmul.f32 %v2062_v12, %v2062_v12 }
 0x2a7   : > { %v1553_v53 = vpop.f32.mrf.mxu1 }
 0x2a8   : > { %v1624_v63 = vmul.f32 %v1553_v53, %v1553_v53 }
 0x2a9   : > { %v3361_v37 = vpop.f32.mrf.mxu1 }
 0x2aa   : > { %v1640_v34 = vmul.f32 %v1624_v63, %v1553_v53 }
 0x2ab   : > { %v1563_v23 = vpop.f32.mrf.mxu1 }
 0x2ac   : > { %v1626_v10 = vmul.f32 %v1563_v23, %v1563_v23 }
 0x2ad   : > { %v3363_v47 = vpop.f32.mrf.mxu1 }
 0x2af   : > { %v1573_v46 = vpop.f32.mrf.mxu1 }
 0x2b1   : > { %v2071_v40 = vpop.f32.mrf.mxu1 }
 0x343   : > { %v1997_v50 = vpop.f32.mrf.mxu0 }
 0x344   : > { %v1603_v13 = vsub.f32 %v2053_v7, %v1997_v50 }
 0x345   : > { %v1249_v60 = vpop.f32.mrf.mxu0 }
 0x346   : > { %v1602_v6 = vsub.f32 %v1523_v0, %v1249_v60  ;;  %v1651_v5 = vmul.f32 %v1603_v13, %v1603_v13  ;;  %v1583_v0 = vpop.f32.mrf.mxu1  ;;  %v1642_v60 = vmul.f32 %v1626_v10, %v1563_v23 }
 0x347   : > { %v2000_v3 = vpop.f32.mrf.mxu0 }
 0x348   : > { %v1650_v18 = vmul.f32 %v1602_v6, %v1602_v6  ;;  %v1605_v62 = vsub.f32 %v2056_v48, %v2000_v3  ;;  %v1667_v33 = vmul.f32 %v1651_v5, %v1635_v26  ;;  %v1641_v48 = vmul.f32 %v2062_v12, %v1625_v8 }
 0x349   : > { %v1259_v21 = vpop.f32.mrf.mxu0 }
 0x34a   : > { %v1666_v30 = vmul.f32 %v1650_v18, %v1634_v4  ;;  %v1604_v44 = vsub.f32 %v1533_v31, %v1259_v21  ;;  %v1653_v43 = vmul.f32 %v1605_v62, %v1605_v62  ;;  %v2074_v18 = vpop.f32.mrf.mxu1 }
 0x34b   : > { %v2003_v19 = vpop.f32.mrf.mxu0 }
 0x34c   : > { %v1652_v38 = vmul.f32 %v1604_v44, %v1604_v44  ;;  %v1607_v54 = vsub.f32 %v2059_v29, %v2003_v19  ;;  %v1683_v27 = vadd.f32 %v1667_v33, %v1666_v30  ;;  %v1669_v52 = vmul.f32 %v1653_v43, %v1637_v51 }
 0x34d   : > { %v1269_v61 = vpop.f32.mrf.mxu0  ;;  %v1631_v51 = vmul.f32 %v2071_v40, %v2071_v40 }
 0x34e   : > { %v1668_v42 = vmul.f32 %v1652_v38, %v1636_v17  ;;  %v1606_v16 = vsub.f32 %v1543_v28, %v1269_v61  ;;  %v1655_v58 = vmul.f32 %v1607_v54, %v1607_v54  ;;  %v1627_v28 = vmul.f32 %v3361_v37, %v3361_v37  ;;  %v1593_v38 = vpop.f32.mrf.mxu1 }
 0x34f   : > { %v2006_v39 = vpop.f32.mrf.mxu0 }
 0x350   : > { %v1684_v22 = vadd.f32 %v1683_v27, %v1668_v42  ;;  %v1654_v14 = vmul.f32 %v1606_v16, %v1606_v16  ;;  %v1609_v11 = vsub.f32 %v2062_v12, %v2006_v39  ;;  %v1671_v36 = vmul.f32 %v1655_v58, %v1639_v25 }
 0x351   : > { %v1279_v1 = vpop.f32.mrf.mxu0  ;;  %v1629_v12 = vmul.f32 %v3363_v47, %v3363_v47  ;;  %v1643_v62 = vmul.f32 %v3361_v37, %v1627_v28  ;;  %v1647_v58 = vmul.f32 %v2071_v40, %v1631_v51 }
 0x352   : > { %v1670_v20 = vmul.f32 %v1654_v14, %v1638_v35  ;;  %v1685_v41 = vadd.f32 %v1684_v22, %v1669_v52  ;;  %v1608_v45 = vsub.f32 %v1553_v53, %v1279_v1  ;;  %v1657_v32 = vmul.f32 %v1609_v11, %v1609_v11 }
 0x353   : > { %v2009_v49 = vpop.f32.mrf.mxu0  ;;  %v1628_v53 = vmul.f32 %v1573_v46, %v1573_v46  ;;  %v1645_v54 = vmul.f32 %v3363_v47, %v1629_v12  ;;  %v1632_v52 = vmul.f32 %v1593_v38, %v1593_v38  ;;  %v1633_v11 = vmul.f32 %v2074_v18, %v2074_v18 }
 0x354   : > { %v1686_v15 = vadd.f32 %v1685_v41, %v1670_v20  ;;  %v1656_v24 = vmul.f32 %v1608_v45, %v1608_v45  ;;  %v1611_v7 = vsub.f32 %v3361_v37, %v2009_v49  ;;  %v1673_v13 = vmul.f32 %v1657_v32, %v1641_v48 }
 0x355   : > { %v1289_v31 = vpop.f32.mrf.mxu0  ;;  %v1644_v30 = vmul.f32 %v1628_v53, %v1573_v46  ;;  %v1648_v25 = vmul.f32 %v1632_v52, %v1593_v38  ;;  %v1649_v32 = vmul.f32 %v2074_v18, %v1633_v11 }
 0x356   : > { %v1672_v57 = vmul.f32 %v1656_v24, %v1640_v34  ;;  %v1687_v29 = vadd.f32 %v1686_v15, %v1671_v36  ;;  %v1610_v50 = vsub.f32 %v1563_v23, %v1289_v31  ;;  %v1659_v4 = vmul.f32 %v1611_v7, %v1611_v7  ;;  %v1682_v15 = vld [vmem:[%s2572_s7] sm:$0xff] }
 0x357   : > { %v2012_v56 = vpop.f32.mrf.mxu0  ;;  %v1630_v23 = vmul.f32 %v1583_v0, %v1583_v0 }
 0x358   : > { %v1688_v6 = vadd.f32 %v1687_v29, %v1672_v57  ;;  %v1658_v3 = vmul.f32 %v1610_v50, %v1610_v50  ;;  %v1613_v5 = vsub.f32 %v3363_v47, %v2012_v56  ;;  %v1675_v9 = vmul.f32 %v1659_v4, %v1643_v62 }
 0x359   : > { %v1299_v2 = vpop.f32.mrf.mxu0  ;;  %v1646_v16 = vmul.f32 %v1630_v23, %v1583_v0 }
 0x35a   : > { %v1674_v55 = vmul.f32 %v1658_v3, %v1642_v60  ;;  %v1689_v21 = vadd.f32 %v1688_v6, %v1673_v13  ;;  %v1612_v26 = vsub.f32 %v1573_v46, %v1299_v2  ;;  %v1661_v44 = vmul.f32 %v1613_v5, %v1613_v5 }
 0x35b   : > { %v2015_v43 = vpop.f32.mrf.mxu0 }
 0x35c   : > { %v1690_v19 = vadd.f32 %v1689_v21, %v1674_v55  ;;  %v1660_v33 = vmul.f32 %v1612_v26, %v1612_v26  ;;  %v1615_v17 = vsub.f32 %v2071_v40, %v2015_v43  ;;  %v1677_v37 = vmul.f32 %v1661_v44, %v1645_v54 }
 0x35d   : > { %v1309_v61 = vpop.f32.mrf.mxu0 }
 0x35e   : > { %v1676_v27 = vmul.f32 %v1660_v33, %v1644_v30  ;;  %v1691_v59 = vadd.f32 %v1690_v19, %v1675_v9  ;;  %v1614_v42 = vsub.f32 %v1583_v0, %v1309_v61  ;;  %v1663_v63 = vmul.f32 %v1615_v17, %v1615_v17 }
 0x35f   : > { %v2018_v35 = vpop.f32.mrf.mxu0 }
 0x360   : > { %v1692_v46 = vadd.f32 %v1691_v59, %v1676_v27  ;;  %v1662_v39 = vmul.f32 %v1614_v42, %v1614_v42  ;;  %v1617_v22 = vsub.f32 %v2074_v18, %v2018_v35  ;;  %v1679_v20 = vmul.f32 %v1663_v63, %v1647_v58 }
 0x361   : > { %v1319_v14 = vpop.f32.mrf.mxu0 }
 0x362   : > { %v1678_v47 = vmul.f32 %v1662_v39, %v1646_v16  ;;  %v1693_v8 = vadd.f32 %v1692_v46, %v1677_v37  ;;  %v1616_v1 = vsub.f32 %v1593_v38, %v1319_v14  ;;  %v1665_v45 = vmul.f32 %v1617_v22, %v1617_v22 }
 0x364   : > { %v1694_v41 = vadd.f32 %v1693_v8, %v1678_v47  ;;  %v1664_v34 = vmul.f32 %v1616_v1, %v1616_v1  ;;  %v1681_v40 = vmul.f32 %v1665_v45, %v1649_v32 }
 0x366   : > { %v1680_v10 = vmul.f32 %v1664_v34, %v1648_v25  ;;  %v1695_v49 = vadd.f32 %v1694_v41, %v1679_v20 }
 0x368   : > { %v1696_v36 = vadd.f32 %v1695_v49, %v1680_v10 }
 0x36a   : > { %v1697_v24 = vadd.f32 %v1696_v36, %v1681_v40 }
 0x36c   : > { %v1698_v7 = vadd.f32 %v1697_v24, %v1682_v15 }
 0x36e   : > { %1699 = vst [vmem:[%s2572_s7] sm:$0xff] %v1698_v7 }
 0x36f   : > { %2351 = shalt.err (!%p2348_p8)
}
 0x370   : > { %s2352_s18 = scalar_lea.hbm %s1712_s27, 128  ;;  %s2356_s15 = scalar_lea.hbm %s3428_s6, 256 }
 0x371   : > { %p2353_p10 = scmp.ne.s32.totalorder %s1712_s27, %s2352_s18  ;;  %p2357_p13 = scmp.lt.s32.totalorder %s1712_s27, %s3428_s6 }
 0x372   : > { %p2358_p0 = scmp.lt.s32.totalorder %s2356_s15, %s2352_s18 }
 0x373   : > { %p2354_p11 = pnand %p2353_p10, %p2517_p3 }
 0x374   : > { %p2359_p1 = por %p2358_p0, %p2357_p13 }
 0x375   : > { %p2355_p12 = pneg %p2354_p11 }
 0x377   : > { %p2360_p2 = pnand %p2359_p1, %p2355_p12 }
 0x379   : > { %2363 = shalt.err (!%p2360_p2)
}
 0x37a   : > { %2075 = dma.vmem_to_hbm [thread:$0]  (%p2517_p3), %s1715_s1, 128, %s1712_s27, %s1701_s13  }
 0x37b PF: > { %p2081_p4 = scmp.ge.s32.totalorder %s2430_s28, 2  ;;  %s1726_s30 = sand.u32 1, %s2402_s21  }
 0x37c   : > { %s1727_s11 = scalar_lea.sflag [#allocation4], %s1726_s30 }
 0x37d   : > { %p2078_p5 = pnand %p2081_p4, %p2527_p9 }
 0x37f   : > { %p2079_p6 = pneg %p2078_p5 }
 0x381   : > { %2397 = dma.done.wait (%p2079_p6), %s1727_s11, 128  }
 0x382   : > { %2399 = vsyncadd (%p2079_p6), %s1727_s11, 4294967168  ;;  %s19_s28 = sadd.s32 1, %s2430_s28   ;;  %s3472_s7 = sld [smem:[#allocation10_spill]] }
 0x383   : > { %p16_p7 = scmp.ge.s32.totalorder %s19_s28, 6   ;;  %s3473_s24 = sld [smem:[#allocation6_spill]] }
 0x384   : > { %s3474_s25 = sld [smem:[#allocation7_spill]]  ;;  %s3477_s21 = smov %s2406_s22 }
 0x385   : > { %s3475_s26 = sld [smem:[#allocation8_spill]]  ;;  %s3478_s22 = smov %s2410_s23 }
 0x386   : > { %s3476_s27 = sld [smem:[#allocation9_spill]]  ;;  %18 = sbr.rel (!%p16_p7) target bundleno = 8 (0x8), region = 98 }
 0x388   : > { %s3479_s23 = smov %s3472_s7 }
 0x38b   :  { %1732 = vsyncpa [#allocation4], 1 }
 0x38c   :  { %1734 = vsyncpa [#allocation4 + $0x1], 1 }

</bundles_post_ra>
